<compile_context>
chip_gen: v5e
topology: v5e:2x2
jax: 0.10.0
libtpu: 0.0.40
codegen_flags: <defaults>
</compile_context>

<pallas_src>
import jax
import jax.numpy as jnp
from jax.experimental import pallas as pl
from jax.experimental.pallas import tpu as pltpu


K_IN = 28 * 28   # 784 flattened pixels; ragged contraction handled by Mosaic
HID = 512
N_OUT = 10
N_PAD = 128      # lane-dense output width (sliced back to 10 in the wrapper)


def mlp_kernel(x_ref, w1_ref, b1_ref, w2_ref, b2_ref, w3_ref, b3_ref, o_ref):
    # x arrives as raw f32 from the caller's array; cast to bf16 here so there is
    # no separate wrapper-side pad/cast pass over the batch.  Weights are resident
    # bf16, accumulation is f32, bias-add / ReLU stay f32 (safe on v5e).
    x = x_ref[...].astype(jnp.bfloat16)                                   # (TB, 784)
    h1 = jnp.dot(x, w1_ref[...], preferred_element_type=jnp.float32) + b1_ref[...]
    h1 = jnp.maximum(h1, 0.0).astype(jnp.bfloat16)                        # (TB, 512)
    h2 = jnp.dot(h1, w2_ref[...], preferred_element_type=jnp.float32) + b2_ref[...]
    h2 = jnp.maximum(h2, 0.0).astype(jnp.bfloat16)                        # (TB, 512)
    o_ref[...] = (
        jnp.dot(h2, w3_ref[...], preferred_element_type=jnp.float32) + b3_ref[...]
    )                                                                     # (TB, 128)


def _round_up(a, m):
    return ((a + m - 1) // m) * m


def _vmem_budget_bytes(tb):
    # Resident bf16 weights + f32 biases (counted double-buffered for safety).
    weights = 2 * 2 * (K_IN * HID + HID * HID + HID * N_PAD)
    biases = 2 * 4 * (HID + HID + N_PAD)
    x_io = 2 * tb * K_IN * 4            # double-buffered f32 input tile
    out_io = 2 * tb * N_PAD * 4         # double-buffered f32 output tile
    scratch = 8 * tb * HID * 4          # f32 h1/h2 + bf16 copies + slack
    headroom = 8 << 20
    budget = weights + biases + x_io + out_io + scratch + headroom
    # Never set the cap below the per-generation scoped-VMEM default (32 MiB).
    return int(max(budget, 32 << 20))


def prepare_params(params):
    """One-time weight prep (bf16 casts + lane-dense logit padding), cached by caller."""
    w1, b1, w2, b2, w3, b3 = params
    w1_p = w1.astype(jnp.bfloat16)                                        # (784, 512)
    w2_p = w2.astype(jnp.bfloat16)                                        # (512, 512)
    w3_p = jnp.pad(w3.astype(jnp.bfloat16), ((0, 0), (0, N_PAD - N_OUT)))  # (512, 128)
    b3_p = jnp.pad(b3, ((0, 0), (0, N_PAD - N_OUT)))                      # (1, 128) f32
    return (w1_p, b1, w2_p, b2, w3_p, b3_p)


def neural_network_forward(x, prepared, *, tb_max=1024):
    """x: (B, 28, 28) float32.  prepared: output of prepare_params.  Returns (B, 10) f32."""
    w1_p, b1, w2_p, b2, w3_p, b3_p = prepared
    B = x.shape[0]
    x_flat = x.reshape(B, K_IN)                                           # nn.Flatten()

    # Batch tile: multiple of 8 sublanes, <= tb_max, and chosen so the grid has
    # at least 2 steps whenever B allows it (v7x megacore sharding).
    b8 = _round_up(max(B, 1), 8)
    tb = min(tb_max, max(8, _round_up((b8 + 1) // 2, 8)))
    b_pad = _round_up(b8, tb)

    # Only the batch rows are padded (cheap / elided when B % tb == 0); the
    # K-dim pad and bf16 cast are fused into the kernel.
    x_p = jnp.pad(x_flat, ((0, b_pad - B), (0, 0)))

    grid = (b_pad // tb,)

    def resident(shape):
        return pl.BlockSpec(shape, lambda i: tuple(0 for _ in shape))

    out = pl.pallas_call(
        mlp_kernel,
        out_shape=jax.ShapeDtypeStruct((b_pad, N_PAD), jnp.float32),
        grid_spec=pltpu.PrefetchScalarGridSpec(
            num_scalar_prefetch=0,
            grid=grid,
            in_specs=[
                pl.BlockSpec((tb, K_IN), lambda i: (i, 0)),    # x: pipelined over B
                resident((K_IN, HID)), resident((1, HID)),     # w1, b1: resident
                resident((HID, HID)), resident((1, HID)),      # w2, b2: resident
                resident((HID, N_PAD)), resident((1, N_PAD)),  # w3, b3: resident
            ],
            out_specs=pl.BlockSpec((tb, N_PAD), lambda i: (i, 0)),
        ),
        compiler_params=pltpu.CompilerParams(
            dimension_semantics=("parallel",),
            vmem_limit_bytes=_vmem_budget_bytes(tb),
        ),
    )(x_p, w1_p, b1, w2_p, b2, w3_p, b3_p)

    return out[:B, :N_OUT]


def init_params(key):
    """Deterministic init matching nn.Linear shapes: 784->512, 512->512, 512->10."""
    ks = jax.random.split(key, 6)

    def linear(kw, kb, fan_in, fan_out):
        bound = 1.0 / jnp.sqrt(fan_in)
        w = jax.random.uniform(kw, (fan_in, fan_out), jnp.float32, -bound, bound)
        b = jax.random.uniform(kb, (1, fan_out), jnp.float32, -bound, bound)
        return w, b

    w1, b1 = linear(ks[0], ks[1], K_IN, HID)
    w2, b2 = linear(ks[2], ks[3], HID, HID)
    w3, b3 = linear(ks[4], ks[5], HID, N_OUT)
    return (w1, b1, w2, b2, w3, b3)


def reference_forward(x, params):
    w1, b1, w2, b2, w3, b3 = params
    h = x.reshape(x.shape[0], -1)
    h = jnp.maximum(h @ w1 + b1, 0.0)
    h = jnp.maximum(h @ w2 + b2, 0.0)
    return h @ w3 + b3


if __name__ == "__main__":
    key = jax.random.PRNGKey(0)
    k_x, k_p = jax.random.split(key)
    # Small batch of "images" matching the module's expected 28x28 input.
    x = jax.random.uniform(k_x, (2, 28, 28), jnp.float32)
    params = init_params(k_p)
    prepared = prepare_params(params)      # one-time weight prep, reused every call

    logits = neural_network_forward(x, prepared)
    logits = jax.block_until_ready(logits)

    ref = reference_forward(x, params)
    assert logits.shape == (2, 10)
    # bf16 matmul inputs with f32 accumulation -> relaxed tolerance vs. f32 reference.
    assert jnp.allclose(logits, ref, atol=5e-2, rtol=5e-2)
    print("KERNEL_OK")
</pallas_src>

<mosaic_0001>
module attributes {stable_mosaic.version = 11 : i64} {
  func.func @mlp_kernel(%arg0: i32, %arg1: memref<8x784xf32, #tpu.memory_space<vmem>>, %arg2: memref<784x512xbf16, #tpu.memory_space<vmem>>, %arg3: memref<1x512xf32, #tpu.memory_space<vmem>>, %arg4: memref<512x512xbf16, #tpu.memory_space<vmem>>, %arg5: memref<1x512xf32, #tpu.memory_space<vmem>>, %arg6: memref<512x128xbf16, #tpu.memory_space<vmem>>, %arg7: memref<1x128xf32, #tpu.memory_space<vmem>>, %arg8: memref<8x128xf32, #tpu.memory_space<vmem>>) attributes {dimension_semantics = [#tpu.dimension_semantics<parallel>], iteration_bounds = array<i64: 1>, scalar_prefetch = 0 : i64, scratch_operands = 0 : i64, tpu.core_type = #tpu.core_type<tc>, window_params = [{transform_indices = @transform_0, window_bounds = array<i64: 8, 784>}, {pipeline_mode = #tpu.pipeline_mode<synchronous>, transform_indices = @transform_1, window_bounds = array<i64: 784, 512>}, {pipeline_mode = #tpu.pipeline_mode<synchronous>, transform_indices = @transform_2, window_bounds = array<i64: 1, 512>}, {pipeline_mode = #tpu.pipeline_mode<synchronous>, transform_indices = @transform_3, window_bounds = array<i64: 512, 512>}, {pipeline_mode = #tpu.pipeline_mode<synchronous>, transform_indices = @transform_4, window_bounds = array<i64: 1, 512>}, {pipeline_mode = #tpu.pipeline_mode<synchronous>, transform_indices = @transform_5, window_bounds = array<i64: 512, 128>}, {pipeline_mode = #tpu.pipeline_mode<synchronous>, transform_indices = @transform_6, window_bounds = array<i64: 1, 128>}, {transform_indices = @transform_7, window_bounds = array<i64: 8, 128>}]} {
    %c0 = arith.constant 0 : index
    %c0_0 = arith.constant 0 : index
    %0 = vector.load %arg1[%c0, %c0_0] : memref<8x784xf32, #tpu.memory_space<vmem>>, vector<8x784xf32>
    %1 = arith.truncf %0 : vector<8x784xf32> to vector<8x784xbf16>
    %c0_1 = arith.constant 0 : index
    %c0_2 = arith.constant 0 : index
    %2 = vector.load %arg2[%c0_1, %c0_2] : memref<784x512xbf16, #tpu.memory_space<vmem>>, vector<784x512xbf16>
    %cst = arith.constant dense<0.000000e+00> : vector<8x512xf32>
    %3 = tpu.matmul %1, %2, %cst {dimension_numbers = #tpu.dot_dimension_numbers<[1], [0], [0], [1], [0, 0, 1, 1], [], []>} : vector<8x784xbf16>, vector<784x512xbf16>, vector<8x512xf32> -> vector<8x512xf32>
    %c0_3 = arith.constant 0 : index
    %c0_4 = arith.constant 0 : index
    %4 = vector.load %arg3[%c0_3, %c0_4] : memref<1x512xf32, #tpu.memory_space<vmem>>, vector<1x512xf32>
    %5 = vector.broadcast %4 : vector<1x512xf32> to vector<8x512xf32>
    %6 = arith.addf %3, %5 : vector<8x512xf32>
    %cst_5 = arith.constant 0.000000e+00 : f32
    %7 = vector.broadcast %cst_5 : f32 to vector<8x512xf32>
    %8 = arith.maximumf %6, %7 : vector<8x512xf32>
    %9 = arith.truncf %8 : vector<8x512xf32> to vector<8x512xbf16>
    %c0_6 = arith.constant 0 : index
    %c0_7 = arith.constant 0 : index
    %10 = vector.load %arg4[%c0_6, %c0_7] : memref<512x512xbf16, #tpu.memory_space<vmem>>, vector<512x512xbf16>
    %cst_8 = arith.constant dense<0.000000e+00> : vector<8x512xf32>
    %11 = tpu.matmul %9, %10, %cst_8 {dimension_numbers = #tpu.dot_dimension_numbers<[1], [0], [0], [1], [0, 0, 1, 1], [], []>} : vector<8x512xbf16>, vector<512x512xbf16>, vector<8x512xf32> -> vector<8x512xf32>
    %c0_9 = arith.constant 0 : index
    %c0_10 = arith.constant 0 : index
    %12 = vector.load %arg5[%c0_9, %c0_10] : memref<1x512xf32, #tpu.memory_space<vmem>>, vector<1x512xf32>
    %13 = vector.broadcast %12 : vector<1x512xf32> to vector<8x512xf32>
    %14 = arith.addf %11, %13 : vector<8x512xf32>
    %cst_11 = arith.constant 0.000000e+00 : f32
    %15 = vector.broadcast %cst_11 : f32 to vector<8x512xf32>
    %16 = arith.maximumf %14, %15 : vector<8x512xf32>
    %17 = arith.truncf %16 : vector<8x512xf32> to vector<8x512xbf16>
    %c0_12 = arith.constant 0 : index
    %c0_13 = arith.constant 0 : index
    %18 = vector.load %arg6[%c0_12, %c0_13] : memref<512x128xbf16, #tpu.memory_space<vmem>>, vector<512x128xbf16>
    %cst_14 = arith.constant dense<0.000000e+00> : vector<8x128xf32>
    %19 = tpu.matmul %17, %18, %cst_14 {dimension_numbers = #tpu.dot_dimension_numbers<[1], [0], [0], [1], [0, 0, 1, 1], [], []>} : vector<8x512xbf16>, vector<512x128xbf16>, vector<8x128xf32> -> vector<8x128xf32>
    %c0_15 = arith.constant 0 : index
    %c0_16 = arith.constant 0 : index
    %20 = vector.load %arg7[%c0_15, %c0_16] : memref<1x128xf32, #tpu.memory_space<vmem>>, vector<1x128xf32>
    %21 = vector.broadcast %20 : vector<1x128xf32> to vector<8x128xf32>
    %22 = arith.addf %19, %21 : vector<8x128xf32>
    %c0_17 = arith.constant 0 : index
    %c0_18 = arith.constant 0 : index
    %23 = vector.load %arg8[%c0_17, %c0_18] : memref<8x128xf32, #tpu.memory_space<vmem>>, vector<8x128xf32>
    tpu.vector_store %arg8[%c0_17, %c0_18], %22 {strides = array<i32>} : memref<8x128xf32, #tpu.memory_space<vmem>>, vector<8x128xf32>,
    return
  }
  func.func @transform_0(%arg0: i32) -> (i32, i32) {
    %c0_i32 = arith.constant 0 : i32
    %c0_i32_0 = arith.constant 0 : i32
    return %arg0, %c0_i32 : i32, i32
  }
  func.func @transform_1(%arg0: i32) -> (i32, i32) {
    %c0_i32 = arith.constant 0 : i32
    %c0_i32_0 = arith.constant 0 : i32
    %c0_i32_1 = arith.constant 0 : i32
    return %c0_i32, %c0_i32_0 : i32, i32
  }
  func.func @transform_2(%arg0: i32) -> (i32, i32) {
    %c0_i32 = arith.constant 0 : i32
    %c0_i32_0 = arith.constant 0 : i32
    %c0_i32_1 = arith.constant 0 : i32
    return %c0_i32, %c0_i32_0 : i32, i32
  }
  func.func @transform_3(%arg0: i32) -> (i32, i32) {
    %c0_i32 = arith.constant 0 : i32
    %c0_i32_0 = arith.constant 0 : i32
    %c0_i32_1 = arith.constant 0 : i32
    return %c0_i32, %c0_i32_0 : i32, i32
  }
  func.func @transform_4(%arg0: i32) -> (i32, i32) {
    %c0_i32 = arith.constant 0 : i32
    %c0_i32_0 = arith.constant 0 : i32
    %c0_i32_1 = arith.constant 0 : i32
    return %c0_i32, %c0_i32_0 : i32, i32
  }
  func.func @transform_5(%arg0: i32) -> (i32, i32) {
    %c0_i32 = arith.constant 0 : i32
    %c0_i32_0 = arith.constant 0 : i32
    %c0_i32_1 = arith.constant 0 : i32
    return %c0_i32, %c0_i32_0 : i32, i32
  }
  func.func @transform_6(%arg0: i32) -> (i32, i32) {
    %c0_i32 = arith.constant 0 : i32
    %c0_i32_0 = arith.constant 0 : i32
    %c0_i32_1 = arith.constant 0 : i32
    return %c0_i32, %c0_i32_0 : i32, i32
  }
  func.func @transform_7(%arg0: i32) -> (i32, i32) {
    %c0_i32 = arith.constant 0 : i32
    %c0_i32_0 = arith.constant 0 : i32
    return %arg0, %c0_i32 : i32, i32
  }
}

</mosaic_0001>

<bundles_post_ra>
// kernel: tpu_custom_call.1
= control target key start
LH: loop header
LB: loop body
LE: loop exit
PB: predicated region body
PF: predicated region fallthrough
CT: control target
= control target key end

     0   :  { %12 = vsyncpa [#allocation3], 0  ;;  %s5201_s0 = inlined_call_operand.hbm [shape: f32[8,784], index: 0, kind: input, shape index: {}]   ;;  %s5202_s1 = inlined_call_operand.hbm [shape: bf16[784,512], index: 1, kind: input, shape index: {}]   ;;  %s5203_s2 = inlined_call_operand.hbm [shape: f32[1,512], index: 2, kind: input, shape index: {}]   ;;  %s5204_s3 = inlined_call_operand.hbm [shape: bf16[512,512], index: 3, kind: input, shape index: {}]   ;;  %s5205_s4 = inlined_call_operand.hbm [shape: f32[1,512], index: 4, kind: input, shape index: {}]   ;;  %s5206_s5 = inlined_call_operand.hbm [shape: bf16[512,128], index: 5, kind: input, shape index: {}]   ;;  %s5207_s6 = inlined_call_operand.vmem [shape: f32[1,128], index: 6, kind: input, shape index: {}]   ;;  %s5208_s7 = inlined_call_operand.hbm [shape: f32[8,128], index: 7, kind: output, shape index: {}]  }
   0x1   :  { %13 = vsyncpa [#allocation6], 0 }
   0x2   :  { %14 = vsyncpa [#allocation9], 0 }
   0x3   :  { %15 = vsyncpa [#allocation12], 0  ;;  %s32_s26 = sshll.u32 %s5202_s1, 4  ;;  %s33_s26 = int_to_ptr.hbm [resolvable:$true] %s32_s26 }
   0x4   :  { %16 = vsyncpa [#allocation4], 0  ;;  %s4993_s27 = smov [#allocation5]   ;;  %s56_s8 = sshll.u32 %s5204_s3, 4  ;;  %s57_s8 = int_to_ptr.hbm [resolvable:$true] %s56_s8 }
   0x5   :  { %s34_s28 = sshll.u32 %s4993_s27, 4  ;;  %s4994_s9 = smov 256   ;;  %s35_s28 = int_to_ptr.vmem [resolvable:$true] %s34_s28 }
   0x6   :  { %s4995_s10 = smov 16   ;;  %s4996_s11 = smov [#allocation8]  }
   0x7   :  { %40 = dma.hbm_to_vmem [thread:$0]  %s33_s26, 25088, %s35_s28, [#allocation6], %s4994_s9, %s4994_s9, %s4995_s10  }
   0x8   :  { %s58_s12 = sshll.u32 %s4996_s11, 4  ;;  %s22_s15 = sshll.u32 %s5201_s0, 4  ;;  %s59_s12 = int_to_ptr.vmem [resolvable:$true] %s58_s12  ;;  %s23_s15 = int_to_ptr.hbm [resolvable:$true] %s22_s15 }
   0x9   :  { %64 = dma.hbm_to_vmem [thread:$0]  %s57_s8, 16384, %s59_s12, [#allocation9], %s4994_s9, %s4994_s9, %s4995_s10  }
   0xa   :  { %s46_s17 = sshll.u32 %s5203_s2, 4  ;;  %s4997_s18 = smov [#allocation2]   ;;  %s47_s17 = int_to_ptr.hbm [resolvable:$true] %s46_s17 }
   0xb   :  { %s24_s19 = sshll.u32 %s4997_s18, 4  ;;  %s4998_s3 = smov [#allocation7]   ;;  %s25_s19 = int_to_ptr.vmem [resolvable:$true] %s24_s19 }
   0xc   :  { %27 = dma.hbm_to_vmem [thread:$0]  %s23_s15, 896, %s25_s19, [#allocation3]  }
   0xd   :  { %s48_s20 = sshll.u32 %s4998_s3, 4  ;;  %s70_s23 = sshll.u32 %s5205_s4, 4  ;;  %s49_s20 = int_to_ptr.vmem [resolvable:$true] %s48_s20  ;;  %s71_s23 = int_to_ptr.hbm [resolvable:$true] %s70_s23 }
   0xe   :  { %51 = dma.hbm_to_vmem [thread:$0]  %s47_s17, 64, %s49_s20, [#allocation6]  }
   0xf   :  { %s80_s25 = sshll.u32 %s5206_s5, 4  ;;  %s4999_s26 = smov [#allocation10]   ;;  %s81_s25 = int_to_ptr.hbm [resolvable:$true] %s80_s25 }
  0x10   :  { %s72_s2 = sshll.u32 %s4999_s26, 4  ;;  %s5000_s27 = smov [#allocation11]   ;;  %s73_s2 = int_to_ptr.vmem [resolvable:$true] %s72_s2 }
  0x11   :  { %75 = dma.hbm_to_vmem [thread:$0]  %s71_s23, 64, %s73_s2, [#allocation9]  }
  0x12   :  { %s82_s28 = sshll.u32 %s5000_s27, 4  ;;  %s5001_s29 = smov 64   ;;  %s83_s28 = int_to_ptr.vmem [resolvable:$true] %s82_s28 }
  0x13   :  { %s5002_s30 = smov 4  }
  0x14   :  { %88 = dma.hbm_to_vmem [thread:$0]  %s81_s25, 4096, %s83_s28, [#allocation12], %s5001_s29, %s5001_s29, %s5002_s30  }
  0x15   :  { %4983 = dma.done.wait [#allocation3], 896  }
  0x16   :  { %4984 = vsyncadd [#allocation3], 4294966400 }
  0x17   :  { %4985 = dma.done.wait [#allocation6], 25152  }
  0x18   :  { %4986 = vsyncadd [#allocation6], 4294942144 }
  0x19   :  { %4987 = dma.done.wait [#allocation9], 16448  }
  0x1a   :  { %4988 = vsyncadd [#allocation9], 4294950848 }
  0x1b   :  { %4989 = dma.done.wait [#allocation12], 4096  }
  0x1c   :  { %4990 = vsyncadd [#allocation12], 4294963200  ;;  %v3133_v0 = vld [vmem:[#allocation5 + $0xe0] sm:$0xf]  ;;  %v4477_v1 = vld [vmem:[#allocation5 + $0xec] sm:$0xf0] }
  0x1d   :  { %v3261_v2 = vld [vmem:[#allocation5 + $0x1e0] sm:$0xf]  ;;  %v3134_v3 = vor.u32 %v4477_v1, %v3133_v0  ;;  %v4509_v4 = vld [vmem:[#allocation5 + $0x1ec] sm:$0xf0]  ;;  %vm1316_vm0 = vcmask 130048   ;;  %s5003_s8 = smov [#allocation13]  }
  0x1e   :  { %v3389_v5 = vld [vmem:[#allocation5 + $0x2e0] sm:$0xf]  ;;  %v4541_v6 = vld [vmem:[#allocation5 + $0x2ec] sm:$0xf0]  ;;  %v3262_v7 = vor.u32 %v4509_v4, %v3261_v2  ;;  %s3004_s9 = sshll.u32 %s5003_s8, 4  ;;  %s3006_s12 = sshll.u32 %s5208_s7, 4  ;;  %s3005_s9 = int_to_ptr.vmem [resolvable:$true] %s3004_s9  ;;  %s3007_s12 = int_to_ptr.hbm [resolvable:$true] %s3006_s12 }
  0x1f   :  { %v3390_v8 = vor.u32 %v4541_v6, %v3389_v5  ;;  %v3517_v9 = vld [vmem:[#allocation5 + $0x3e0] sm:$0xf]  ;;  %v4573_v10 = vld [vmem:[#allocation5 + $0x3ec] sm:$0xf0]  ;;  %1320 = vmatpush.bf16.msra.mxu0 %v3134_v3 }
  0x20   :  { %v3117_v11 = vld [vmem:[#allocation5 + $0xc0] sm:$0xf]  ;;  %v3518_v12 = vor.u32 %v4573_v10, %v3517_v9  ;;  %v4473_v13 = vld [vmem:[#allocation5 + $0xcc] sm:$0xf0]  ;;  %1333 = vmatpush.bf16.msra.mxu1 %v3262_v7 }
  0x21   :  { %v3245_v14 = vld [vmem:[#allocation5 + $0x1c0] sm:$0xf]  ;;  %v4505_v15 = vld [vmem:[#allocation5 + $0x1cc] sm:$0xf0]  ;;  %1346 = vmatpush.bf16.msra.mxu2 %v3390_v8  ;;  %v3118_v16 = vor.u32 %v4473_v13, %v3117_v11 }
  0x22   :  { %v3246_v17 = vor.u32 %v4505_v15, %v3245_v14  ;;  %v3373_v18 = vld [vmem:[#allocation5 + $0x2c0] sm:$0xf]  ;;  %v4537_v19 = vld [vmem:[#allocation5 + $0x2cc] sm:$0xf0]  ;;  %1359 = vmatpush.bf16.msra.mxu3 %v3518_v12 }
  0x23   :  { %v3501_v20 = vld [vmem:[#allocation5 + $0x3c0] sm:$0xf]  ;;  %v3374_v21 = vor.u32 %v4537_v19, %v3373_v18  ;;  %v4569_v22 = vld [vmem:[#allocation5 + $0x3cc] sm:$0xf0]  ;;  %1321 = vmatpush.bf16.msra.mxu0 %v3118_v16 }
  0x24   :  { %v3101_v23 = vld [vmem:[#allocation5 + $0xa0] sm:$0xf]  ;;  %v4469_v24 = vld [vmem:[#allocation5 + $0xac] sm:$0xf0]  ;;  %v3502_v25 = vor.u32 %v4569_v22, %v3501_v20  ;;  %1334 = vmatpush.bf16.msra.mxu1 %v3246_v17 }
  0x25   :  { %v3229_v26 = vld [vmem:[#allocation5 + $0x1a0] sm:$0xf]  ;;  %v4501_v27 = vld [vmem:[#allocation5 + $0x1ac] sm:$0xf0]  ;;  %v3102_v29 = vor.u32 %v4469_v24, %v3101_v23  ;;  %1347 = vmatpush.bf16.msra.mxu2 %v3374_v21 }
  0x26   :  { %v3357_v28 = vld [vmem:[#allocation5 + $0x2a0] sm:$0xf]  ;;  %v4533_v30 = vld [vmem:[#allocation5 + $0x2ac] sm:$0xf0]  ;;  %v3230_v33 = vor.u32 %v4501_v27, %v3229_v26  ;;  %1360 = vmatpush.bf16.msra.mxu3 %v3502_v25 }
  0x27   :  { %v3485_v31 = vld [vmem:[#allocation5 + $0x3a0] sm:$0xf]  ;;  %v4565_v32 = vld [vmem:[#allocation5 + $0x3ac] sm:$0xf0]  ;;  %v3358_v34 = vor.u32 %v4533_v30, %v3357_v28  ;;  %1322 = vmatpush.bf16.msra.mxu0 %v3102_v29 }
  0x28   :  { %v3085_v35 = vld [vmem:[#allocation5 + $0x80] sm:$0xf]  ;;  %v4465_v36 = vld [vmem:[#allocation5 + $0x8c] sm:$0xf0]  ;;  %v3486_v38 = vor.u32 %v4565_v32, %v3485_v31  ;;  %1335 = vmatpush.bf16.msra.mxu1 %v3230_v33  ;;  %v4475_v33 = vld [vmem:[#allocation5 + $0xe4] sm:$0xf] }
  0x29   :  { %v3213_v37 = vld [vmem:[#allocation5 + $0x180] sm:$0xf]  ;;  %v4497_v39 = vld [vmem:[#allocation5 + $0x18c] sm:$0xf0]  ;;  %v3086_v44 = vor.u32 %v4465_v36, %v3085_v35  ;;  %1348 = vmatpush.bf16.msra.mxu2 %v3358_v34  ;;  %v3135_v34 = vld [vmem:[#allocation5 + $0xf0] sm:$0xf0] }
  0x2a   :  { %v3341_v40 = vld [vmem:[#allocation5 + $0x280] sm:$0xf]  ;;  %v4529_v41 = vld [vmem:[#allocation5 + $0x28c] sm:$0xf0]  ;;  %v3214_v45 = vor.u32 %v4497_v39, %v3213_v37  ;;  %1361 = vmatpush.bf16.msra.mxu3 %v3486_v38  ;;  %v118_v35 = vld [vmem:[#allocation2 + $0x10] sm:$0xff] }
  0x2b   :  { %v3469_v42 = vld [vmem:[#allocation5 + $0x380] sm:$0xf]  ;;  %v4561_v43 = vld [vmem:[#allocation5 + $0x38c] sm:$0xf0]  ;;  %v3342_v46 = vor.u32 %v4529_v41, %v3341_v40  ;;  %1323 = vmatpush.bf16.msra.mxu0 %v3086_v44  ;;  %v116_v40 = vld [vmem:[#allocation2] sm:$0xff] }
  0x2c   :  { %v3069_v47 = vld [vmem:[#allocation5 + $0x60] sm:$0xf]  ;;  %v4461_v48 = vld [vmem:[#allocation5 + $0x6c] sm:$0xf0]  ;;  %v3470_v50 = vor.u32 %v4561_v43, %v3469_v42  ;;  %1336 = vmatpush.bf16.msra.mxu1 %v3214_v45  ;;  %v4507_v43 = vld [vmem:[#allocation5 + $0x1e4] sm:$0xf] }
  0x2d   :  { %v3197_v49 = vld [vmem:[#allocation5 + $0x160] sm:$0xf]  ;;  %v4493_v51 = vld [vmem:[#allocation5 + $0x16c] sm:$0xf0]  ;;  %v3070_v56 = vor.u32 %v4461_v48, %v3069_v47  ;;  %1349 = vmatpush.bf16.msra.mxu2 %v3342_v46  ;;  %v3263_v44 = vld [vmem:[#allocation5 + $0x1f0] sm:$0xf0]  ;;  %v3138_v47 = vor.u32 %v4475_v33, %v3135_v34 }
  0x2e   :  { %v3325_v52 = vld [vmem:[#allocation5 + $0x260] sm:$0xf]  ;;  %v4525_v53 = vld [vmem:[#allocation5 + $0x26c] sm:$0xf0]  ;;  %v3198_v57 = vor.u32 %v4493_v51, %v3197_v49  ;;  %1362 = vmatpush.bf16.msra.mxu3 %v3470_v50  ;;  %v5062_v51 = vpack.c.bf16 %v118_v35, %v118_v35  ;;  %v4491_v35 = vld [vmem:[#allocation5 + $0x164] sm:$0xf] }
  0x2f   :  { %v3453_v54 = vld [vmem:[#allocation5 + $0x360] sm:$0xf]  ;;  %v4557_v55 = vld [vmem:[#allocation5 + $0x36c] sm:$0xf0]  ;;  %v3326_v58 = vor.u32 %v4525_v53, %v3325_v52  ;;  %1324 = vmatpush.bf16.msra.mxu0 %v3070_v56  ;;  %v4471_v53 = vld [vmem:[#allocation5 + $0xc4] sm:$0xf] }
  0x30   :  { %v3053_v59 = vld [vmem:[#allocation5 + $0x40] sm:$0xf]  ;;  %v4457_v60 = vld [vmem:[#allocation5 + $0x4c] sm:$0xf0]  ;;  %v3454_v62 = vor.u32 %v4557_v55, %v3453_v54  ;;  %1337 = vmatpush.bf16.msra.mxu1 %v3198_v57  ;;  %v3119_v54 = vld [vmem:[#allocation5 + $0xd0] sm:$0xf0]  ;;  %v5064_v55 = vpack.c.bf16 %v116_v40, %v116_v40 }
  0x31   :  { %v3181_v61 = vld [vmem:[#allocation5 + $0x140] sm:$0xf]  ;;  %v4489_v63 = vld [vmem:[#allocation5 + $0x14c] sm:$0xf0]  ;;  %v3054_v4 = vor.u32 %v4457_v60, %v3053_v59  ;;  %1350 = vmatpush.bf16.msra.mxu2 %v3326_v58  ;;  %v3266_v59 = vor.u32 %v4507_v43, %v3263_v44  ;;  %v4455_v43 = vld [vmem:[#allocation5 + $0x44] sm:$0xf] }
  0x32   :  { %v3309_v0 = vld [vmem:[#allocation5 + $0x240] sm:$0xf]  ;;  %v4521_v1 = vld [vmem:[#allocation5 + $0x24c] sm:$0xf0]  ;;  %v3182_v5 = vor.u32 %v4489_v63, %v3181_v61  ;;  %1363 = vmatpush.bf16.msra.mxu3 %v3454_v62  ;;  %v4503_v61 = vld [vmem:[#allocation5 + $0x1c4] sm:$0xf] }
  0x33   :  { %v3437_v2 = vld [vmem:[#allocation5 + $0x340] sm:$0xf]  ;;  %v4553_v3 = vld [vmem:[#allocation5 + $0x34c] sm:$0xf0]  ;;  %v3310_v6 = vor.u32 %v4521_v1, %v3309_v0  ;;  %1325 = vmatpush.bf16.msra.mxu0 %v3054_v4  ;;  %v3247_v62 = vld [vmem:[#allocation5 + $0x1d0] sm:$0xf0]  ;;  %v3122_v0 = vor.u32 %v4471_v53, %v3119_v54 }
  0x34   :  { %v3037_v7 = vld [vmem:[#allocation5 + $0x20] sm:$0xf]  ;;  %v4453_v8 = vld [vmem:[#allocation5 + $0x2c] sm:$0xf0]  ;;  %v3438_v10 = vor.u32 %v4553_v3, %v3437_v2  ;;  %1338 = vmatpush.bf16.msra.mxu1 %v3182_v5  ;;  %v4467_v5 = vld [vmem:[#allocation5 + $0xa4] sm:$0xf] }
  0x35   :  { %v3165_v9 = vld [vmem:[#allocation5 + $0x120] sm:$0xf]  ;;  %v4485_v11 = vld [vmem:[#allocation5 + $0x12c] sm:$0xf0]  ;;  %v3038_v16 = vor.u32 %v4453_v8, %v3037_v7  ;;  %1351 = vmatpush.bf16.msra.mxu2 %v3310_v6  ;;  %v3103_v6 = vld [vmem:[#allocation5 + $0xb0] sm:$0xf0]  ;;  %v3250_v8 = vor.u32 %v4503_v61, %v3247_v62 }
  0x36   :  { %v3293_v12 = vld [vmem:[#allocation5 + $0x220] sm:$0xf]  ;;  %v4517_v13 = vld [vmem:[#allocation5 + $0x22c] sm:$0xf0]  ;;  %v3166_v20 = vor.u32 %v4485_v11, %v3165_v9  ;;  %1364 = vmatpush.bf16.msra.mxu3 %v3438_v10  ;;  %v4499_v10 = vld [vmem:[#allocation5 + $0x1a4] sm:$0xf] }
  0x37   :  { %v3421_v14 = vld [vmem:[#allocation5 + $0x320] sm:$0xf]  ;;  %v4549_v15 = vld [vmem:[#allocation5 + $0x32c] sm:$0xf0]  ;;  %v3294_v21 = vor.u32 %v4517_v13, %v3293_v12  ;;  %1326 = vmatpush.bf16.msra.mxu0 %v3038_v16  ;;  %v3231_v11 = vld [vmem:[#allocation5 + $0x1b0] sm:$0xf0]  ;;  %v3106_v13 = vor.u32 %v4467_v5, %v3103_v6 }
  0x38   :  { %v3021_v17 = vld [vmem:[#allocation5] sm:$0xf]  ;;  %v4449_v18 = vld [vmem:[#allocation5 + $0xc] sm:$0xf0]  ;;  %v3422_v25 = vor.u32 %v4549_v15, %v3421_v14  ;;  %1339 = vmatpush.bf16.msra.mxu1 %v3166_v20  ;;  %v3234_v20 = vor.u32 %v4499_v10, %v3231_v11  ;;  %v3055_v44 = vld [vmem:[#allocation5 + $0x50] sm:$0xf0] }
  0x39   :  { %v3149_v19 = vld [vmem:[#allocation5 + $0x100] sm:$0xf]  ;;  %v4481_v22 = vld [vmem:[#allocation5 + $0x10c] sm:$0xf0]  ;;  %v3022_v32 = vor.u32 %v4449_v18, %v3021_v17  ;;  %1352 = vmatpush.bf16.msra.mxu2 %v3294_v21  ;;  %v4463_v18 = vld [vmem:[#allocation5 + $0x84] sm:$0xf] }
  0x3a   :  { %v3277_v23 = vld [vmem:[#allocation5 + $0x200] sm:$0xf]  ;;  %v4513_v24 = vld [vmem:[#allocation5 + $0x20c] sm:$0xf0]  ;;  %v3150_v36 = vor.u32 %v4481_v22, %v3149_v19  ;;  %1365 = vmatpush.bf16.msra.mxu3 %v3422_v25  ;;  %v3087_v19 = vld [vmem:[#allocation5 + $0x90] sm:$0xf0] }
  0x3b   :  { %v3405_v26 = vld [vmem:[#allocation5 + $0x300] sm:$0xf]  ;;  %v4545_v27 = vld [vmem:[#allocation5 + $0x30c] sm:$0xf0]  ;;  %v3278_v37 = vor.u32 %v4513_v24, %v3277_v23  ;;  %1327 = vmatpush.bf16.msra.mxu0 %v3022_v32  ;;  %v4495_v22 = vld [vmem:[#allocation5 + $0x184] sm:$0xf]  ;;  %v3090_v25 = vor.u32 %v4463_v18, %v3087_v19 }
  0x3c   :  { %v3645_v28 = vld [vmem:[#allocation5 + $0x4e0] sm:$0xf]  ;;  %v4605_v29 = vld [vmem:[#allocation5 + $0x4ec] sm:$0xf0]  ;;  %v3406_v41 = vor.u32 %v4545_v27, %v3405_v26  ;;  %1340 = vmatpush.bf16.msra.mxu1 %v3150_v36  ;;  %v3215_v23 = vld [vmem:[#allocation5 + $0x190] sm:$0xf0] }
  0x3d   :  { %v3773_v30 = vld [vmem:[#allocation5 + $0x5e0] sm:$0xf]  ;;  %v4637_v31 = vld [vmem:[#allocation5 + $0x5ec] sm:$0xf0]  ;;  %v3646_v42 = vor.u32 %v4605_v29, %v3645_v28  ;;  %1353 = vmatpush.bf16.msra.mxu2 %v3278_v37  ;;  %v122_v32 = vld [vmem:[#allocation2 + $0x30] sm:$0xff]  ;;  %v3218_v33 = vor.u32 %v4495_v22, %v3215_v23 }
  0x3e   :  { %v3789_v38 = vld [vmem:[#allocation5 + $0x600] sm:$0xf]  ;;  %v4641_v39 = vld [vmem:[#allocation5 + $0x60c] sm:$0xf0]  ;;  %v3774_v46 = vor.u32 %v4637_v31, %v3773_v30  ;;  %1366 = vmatpush.bf16.msra.mxu3 %v3406_v41  ;;  %1328 = vmatmul.bf16.vlgmr.msra.gmra.mxu0 %v5064_v55  ;;  %v4459_v30 = vld [vmem:[#allocation5 + $0x64] sm:$0xf] }
  0x3f   :  { %v119_v45 = vld [vmem:[#allocation2 + $0x18] sm:$0xff]  ;;  %v4601_v49 = vld [vmem:[#allocation5 + $0x4cc] sm:$0xf0]  ;;  %v3790_v56 = vor.u32 %v4641_v39, %v3789_v38  ;;  %1372 = vmatpush.bf16.msrb.mxu0 %v3646_v42  ;;  %v3071_v31 = vld [vmem:[#allocation5 + $0x70] sm:$0xf0] }
  0x40   :  { %v3629_v48 = vld [vmem:[#allocation5 + $0x4c0] sm:$0xf]  ;;  %v4633_v52 = vld [vmem:[#allocation5 + $0x5cc] sm:$0xf0]  ;;  %v5066_v57 = vpack.c.bf16 %v119_v45, %v119_v45  ;;  %1385 = vmatpush.bf16.msrb.mxu1 %v3774_v46  ;;  %1354 = vmatmul.bf16.vlgmr.msra.gmra.mxu2 %v5062_v51  ;;  %v3199_v36 = vld [vmem:[#allocation5 + $0x170] sm:$0xf0]  ;;  %v3074_v38 = vor.u32 %v4459_v30, %v3071_v31  ;;  %v5074_v45 = vpack.c.bf16 %v122_v32, %v122_v32 }
  0x41   :  { %v3757_v50 = vld [vmem:[#allocation5 + $0x5c0] sm:$0xf]  ;;  %v117_v58 = vld [vmem:[#allocation2 + $0x8] sm:$0xff]  ;;  %v3630_v60 = vor.u32 %v4601_v49, %v3629_v48  ;;  %1405 = vmatpush.bf16.msrb.mxu2 %v3790_v56  ;;  %v3202_v46 = vor.u32 %v4491_v35, %v3199_v36  ;;  %v4487_v48 = vld [vmem:[#allocation5 + $0x144] sm:$0xf] }
  0x42   :  { %1411 = vmatpush.bf16.msrb.mxu3 %v3138_v47  ;;  %v3758_v63 = vor.u32 %v4633_v52, %v3757_v50  ;;  %v3613_v1 = vld [vmem:[#allocation5 + $0x4a0] sm:$0xf]  ;;  %v4597_v2 = vld [vmem:[#allocation5 + $0x4ac] sm:$0xf0]  ;;  %v5070_v7 = vpack.c.bf16 %v117_v58, %v117_v58  ;;  %v3183_v49 = vld [vmem:[#allocation5 + $0x150] sm:$0xf0]  ;;  %v3058_v52 = vor.u32 %v4455_v43, %v3055_v44 }
  0x43   :  { %v3741_v3 = vld [vmem:[#allocation5 + $0x5a0] sm:$0xf]  ;;  %v4629_v4 = vld [vmem:[#allocation5 + $0x5ac] sm:$0xf0]  ;;  %1367 = vmatmul.bf16.vlgmr.msra.gmra.mxu3 %v5066_v57  ;;  %1373 = vmatpush.bf16.msrb.mxu0 %v3630_v60  ;;  %v3614_v9 = vor.u32 %v4597_v2, %v3613_v1  ;;  %v3039_v60 = vld [vmem:[#allocation5 + $0x30] sm:$0xf0]  ;;  %v3186_v61 = vor.u32 %v4487_v48, %v3183_v49 }
  0x44   :  { %1386 = vmatpush.bf16.msrb.mxu1 %v3758_v63  ;;  %v3742_v12 = vor.u32 %v4629_v4, %v3741_v3  ;;  %v3597_v14 = vld [vmem:[#allocation5 + $0x480] sm:$0xf]  ;;  %v4593_v15 = vld [vmem:[#allocation5 + $0x48c] sm:$0xf0]  ;;  %v4483_v63 = vld [vmem:[#allocation5 + $0x124] sm:$0xf] }
  0x45   :  { %1424 = vmatpush.bf16.msra.mxu2 %v3266_v59  ;;  %v3725_v16 = vld [vmem:[#allocation5 + $0x580] sm:$0xf]  ;;  %1341 = vmatmul.bf16.vlgmr.msra.gmra.mxu1 %v5070_v7  ;;  %v4625_v17 = vld [vmem:[#allocation5 + $0x58c] sm:$0xf0]  ;;  %v3598_v21 = vor.u32 %v4593_v15, %v3597_v14  ;;  %v4451_v59 = vld [vmem:[#allocation5 + $0x24] sm:$0xf] }
  0x46   :  { %1412 = vmatpush.bf16.msrb.mxu3 %v3122_v0  ;;  %v3726_v24 = vor.u32 %v4625_v17, %v3725_v16  ;;  %v3581_v26 = vld [vmem:[#allocation5 + $0x460] sm:$0xf]  ;;  %v4589_v27 = vld [vmem:[#allocation5 + $0x46c] sm:$0xf0]  ;;  %v3167_v0 = vld [vmem:[#allocation5 + $0x130] sm:$0xf0]  ;;  %v3042_v3 = vor.u32 %v4451_v59, %v3039_v60 }
  0x47   :  { %1374 = vmatpush.bf16.msrb.mxu0 %v3614_v9  ;;  %v3709_v28 = vld [vmem:[#allocation5 + $0x560] sm:$0xf]  ;;  %v4621_v29 = vld [vmem:[#allocation5 + $0x56c] sm:$0xf0]  ;;  %v3582_v34 = vor.u32 %v4589_v27, %v3581_v26  ;;  %v3023_v9 = vld [vmem:[#allocation5 + $0x10] sm:$0xf0]  ;;  %v3170_v14 = vor.u32 %v4483_v63, %v3167_v0 }
  0x48   :  { %1387 = vmatpush.bf16.msrb.mxu1 %v3742_v12  ;;  %v3710_v37 = vor.u32 %v4621_v29, %v3709_v28  ;;  %v3565_v39 = vld [vmem:[#allocation5 + $0x440] sm:$0xf]  ;;  %v4585_v40 = vld [vmem:[#allocation5 + $0x44c] sm:$0xf0]  ;;  %v4539_v10 = vld [vmem:[#allocation5 + $0x2e4] sm:$0xf] }
  0x49   :  { %1425 = vmatpush.bf16.msra.mxu2 %v3250_v8  ;;  %v3693_v41 = vld [vmem:[#allocation5 + $0x540] sm:$0xf]  ;;  %v4617_v42 = vld [vmem:[#allocation5 + $0x54c] sm:$0xf0]  ;;  %v3566_v47 = vor.u32 %v4585_v40, %v3565_v39  ;;  %v4447_v8 = vld [vmem:[#allocation5 + $0x4] sm:$0xf] }
  0x4a   :  { %1413 = vmatpush.bf16.msrb.mxu3 %v3106_v13  ;;  %v3694_v50 = vor.u32 %v4617_v42, %v3693_v41  ;;  %v3549_v53 = vld [vmem:[#allocation5 + $0x420] sm:$0xf]  ;;  %v4581_v54 = vld [vmem:[#allocation5 + $0x42c] sm:$0xf0]  ;;  %v3391_v11 = vld [vmem:[#allocation5 + $0x2f0] sm:$0xf0] }
  0x4b   :  { %1375 = vmatpush.bf16.msrb.mxu0 %v3598_v21  ;;  %v3677_v56 = vld [vmem:[#allocation5 + $0x520] sm:$0xf]  ;;  %v4613_v58 = vld [vmem:[#allocation5 + $0x52c] sm:$0xf0]  ;;  %v3550_v62 = vor.u32 %v4581_v54, %v3549_v53  ;;  %v4571_v12 = vld [vmem:[#allocation5 + $0x3e4] sm:$0xf] }
  0x4c   :  { %1388 = vmatpush.bf16.msrb.mxu1 %v3726_v24  ;;  %v3533_v1 = vld [vmem:[#allocation5 + $0x400] sm:$0xf]  ;;  %v3678_v2 = vor.u32 %v4613_v58, %v3677_v56  ;;  %v4577_v4 = vld [vmem:[#allocation5 + $0x40c] sm:$0xf0]  ;;  %v3519_v13 = vld [vmem:[#allocation5 + $0x3f0] sm:$0xf0]  ;;  %v3394_v24 = vor.u32 %v4539_v10, %v3391_v11 }
  0x4d   :  { %1426 = vmatpush.bf16.msra.mxu2 %v3234_v20  ;;  %v3661_v5 = vld [vmem:[#allocation5 + $0x500] sm:$0xf]  ;;  %v4609_v6 = vld [vmem:[#allocation5 + $0x50c] sm:$0xf0]  ;;  %v3534_v15 = vor.u32 %v4577_v4, %v3533_v1  ;;  %v4603_v16 = vld [vmem:[#allocation5 + $0x4e4] sm:$0xf]  ;;  %v3026_v20 = vor.u32 %v4447_v8, %v3023_v9 }
  0x4e   :  { %1414 = vmatpush.bf16.msrb.mxu3 %v3090_v25  ;;  %v3647_v17 = vld [vmem:[#allocation5 + $0x4f0] sm:$0xf0]  ;;  %v120_v18 = vld [vmem:[#allocation2 + $0x20] sm:$0xff]  ;;  %v3662_v19 = vor.u32 %v4609_v6, %v3661_v5  ;;  %v4479_v21 = vld [vmem:[#allocation5 + $0x104] sm:$0xf]  ;;  %v3522_v25 = vor.u32 %v4571_v12, %v3519_v13 }
  0x4f   :  { %1376 = vmatpush.bf16.msrb.mxu0 %v3582_v34  ;;  %v3151_v22 = vld [vmem:[#allocation5 + $0x110] sm:$0xf0]  ;;  %v4635_v26 = vld [vmem:[#allocation5 + $0x5e4] sm:$0xf]  ;;  %v3650_v29 = vor.u32 %v4603_v16, %v3647_v17  ;;  %v5078_v30 = vpack.c.bf16 %v120_v18, %v120_v18 }
  0x50   :  { %1389 = vmatpush.bf16.msrb.mxu1 %v3710_v37  ;;  %3803 = vmatmul.msk.bf16.vlgmr.msrb.gmra.mxu2 %vm1316_vm0, %v5074_v45  ;;  %v121_v23 = vld [vmem:[#allocation2 + $0x28] sm:$0xff]  ;;  %v4535_v28 = vld [vmem:[#allocation5 + $0x2c4] sm:$0xf]  ;;  %v3154_v34 = vor.u32 %v4479_v21, %v3151_v22 }
  0x51   :  { %1427 = vmatpush.bf16.msra.mxu2 %v3218_v33  ;;  %v3775_v27 = vld [vmem:[#allocation5 + $0x5f0] sm:$0xf0]  ;;  %v4567_v32 = vld [vmem:[#allocation5 + $0x3c4] sm:$0xf]  ;;  %v5080_v35 = vpack.c.bf16 %v121_v23, %v121_v23 }
  0x52   :  { %1415 = vmatpush.bf16.msrb.mxu3 %v3074_v38  ;;  %v3375_v31 = vld [vmem:[#allocation5 + $0x2d0] sm:$0xf0]  ;;  %v4599_v36 = vld [vmem:[#allocation5 + $0x4c4] sm:$0xf]  ;;  %v3778_v38 = vor.u32 %v4635_v26, %v3775_v27 }
  0x53   :  { %1377 = vmatpush.bf16.msrb.mxu0 %v3566_v47  ;;  %v3503_v33 = vld [vmem:[#allocation5 + $0x3d0] sm:$0xf0]  ;;  %v3378_v39 = vor.u32 %v4535_v28, %v3375_v31  ;;  %v4631_v41 = vld [vmem:[#allocation5 + $0x5c4] sm:$0xf] }
  0x54   :  { %1390 = vmatpush.bf16.msrb.mxu1 %v3694_v50  ;;  %v3631_v37 = vld [vmem:[#allocation5 + $0x4d0] sm:$0xf0]  ;;  %v3506_v40 = vor.u32 %v4567_v32, %v3503_v33  ;;  %v4531_v43 = vld [vmem:[#allocation5 + $0x2a4] sm:$0xf] }
  0x55   :  { %1428 = vmatpush.bf16.msra.mxu2 %v3202_v46  ;;  %v3759_v42 = vld [vmem:[#allocation5 + $0x5d0] sm:$0xf0]  ;;  %v3634_v44 = vor.u32 %v4599_v36, %v3631_v37  ;;  %v4563_v47 = vld [vmem:[#allocation5 + $0x3a4] sm:$0xf] }
  0x56   :  { %1416 = vmatpush.bf16.msrb.mxu3 %v3058_v52  ;;  %v3359_v46 = vld [vmem:[#allocation5 + $0x2b0] sm:$0xf0]  ;;  %v4595_v49 = vld [vmem:[#allocation5 + $0x4a4] sm:$0xf]  ;;  %v3762_v52 = vor.u32 %v4631_v41, %v3759_v42 }
  0x57   :  { %1378 = vmatpush.bf16.msrb.mxu0 %v3550_v62  ;;  %v3487_v48 = vld [vmem:[#allocation5 + $0x3b0] sm:$0xf0]  ;;  %v3362_v53 = vor.u32 %v4531_v43, %v3359_v46  ;;  %v4627_v56 = vld [vmem:[#allocation5 + $0x5a4] sm:$0xf] }
  0x58   :  { %1391 = vmatpush.bf16.msrb.mxu1 %v3678_v2  ;;  %v3615_v50 = vld [vmem:[#allocation5 + $0x4b0] sm:$0xf0]  ;;  %v3490_v54 = vor.u32 %v4563_v47, %v3487_v48  ;;  %v4527_v59 = vld [vmem:[#allocation5 + $0x284] sm:$0xf] }
  0x59   :  { %1429 = vmatpush.bf16.msra.mxu2 %v3186_v61  ;;  %v3743_v58 = vld [vmem:[#allocation5 + $0x5b0] sm:$0xf0]  ;;  %v3618_v60 = vor.u32 %v4595_v49, %v3615_v50  ;;  %v4559_v62 = vld [vmem:[#allocation5 + $0x384] sm:$0xf] }
  0x5a   :  { %1417 = vmatpush.bf16.msrb.mxu3 %v3042_v3  ;;  %v3343_v61 = vld [vmem:[#allocation5 + $0x290] sm:$0xf0]  ;;  %v4591_v0 = vld [vmem:[#allocation5 + $0x484] sm:$0xf]  ;;  %v3746_v2 = vor.u32 %v4627_v56, %v3743_v58  ;;  %v3141_v56 = vld [vmem:[#allocation5 + $0xe8] sm:$0xf] }
  0x5b   :  { %1379 = vmatpush.bf16.msrb.mxu0 %v3534_v15  ;;  %v3471_v63 = vld [vmem:[#allocation5 + $0x390] sm:$0xf0]  ;;  %v3346_v3 = vor.u32 %v4527_v59, %v3343_v61  ;;  %v4623_v5 = vld [vmem:[#allocation5 + $0x584] sm:$0xf]  ;;  %v4478_v58 = vld [vmem:[#allocation5 + $0xf4] sm:$0xf0] }
  0x5c   :  { %1392 = vmatpush.bf16.msrb.mxu1 %v3662_v19  ;;  %v3599_v1 = vld [vmem:[#allocation5 + $0x490] sm:$0xf0]  ;;  %v3474_v4 = vor.u32 %v4559_v62, %v3471_v63  ;;  %v4523_v8 = vld [vmem:[#allocation5 + $0x264] sm:$0xf]  ;;  %v3397_v62 = vld [vmem:[#allocation5 + $0x2e8] sm:$0xf] }
  0x5d   :  { %1430 = vmatpush.bf16.msra.mxu2 %v3170_v14  ;;  %v3727_v6 = vld [vmem:[#allocation5 + $0x590] sm:$0xf0]  ;;  %v3602_v9 = vor.u32 %v4591_v0, %v3599_v1  ;;  %v4555_v11 = vld [vmem:[#allocation5 + $0x364] sm:$0xf]  ;;  %v4542_v63 = vld [vmem:[#allocation5 + $0x2f4] sm:$0xf0] }
  0x5e   :  { %1418 = vmatpush.bf16.msrb.mxu3 %v3026_v20  ;;  %1380 = vmatmul.bf16.vlgmr.msrb.gmra.mxu0 %v5078_v30  ;;  %v3327_v10 = vld [vmem:[#allocation5 + $0x270] sm:$0xf0]  ;;  %v4587_v13 = vld [vmem:[#allocation5 + $0x464] sm:$0xf]  ;;  %v3730_v15 = vor.u32 %v4623_v5, %v3727_v6  ;;  %v3142_v5 = vor.u32 %v4478_v58, %v3141_v56  ;;  %v3525_v6 = vld [vmem:[#allocation5 + $0x3e8] sm:$0xf] }
  0x5f   :  { %1437 = vmatpush.bf16.msra.mxu0 %v3394_v24  ;;  %1393 = vmatmul.bf16.vlgmr.msrb.gmra.mxu1 %v5080_v35  ;;  %v3455_v12 = vld [vmem:[#allocation5 + $0x370] sm:$0xf0]  ;;  %v3330_v16 = vor.u32 %v4523_v8, %v3327_v10  ;;  %v4619_v18 = vld [vmem:[#allocation5 + $0x564] sm:$0xf]  ;;  %v4574_v8 = vld [vmem:[#allocation5 + $0x3f4] sm:$0xf0] }
  0x60   :  { %1450 = vmatpush.bf16.msra.mxu1 %v3522_v25  ;;  %v3583_v14 = vld [vmem:[#allocation5 + $0x470] sm:$0xf0]  ;;  %v3458_v17 = vor.u32 %v4555_v11, %v3455_v12  ;;  %v4519_v20 = vld [vmem:[#allocation5 + $0x244] sm:$0xf]  ;;  %v3269_v10 = vld [vmem:[#allocation5 + $0x1e8] sm:$0xf]  ;;  %v3398_v12 = vor.u32 %v4542_v63, %v3397_v62 }
  0x61   :  { %1431 = vmatpush.bf16.msra.mxu2 %v3154_v34  ;;  %1419 = vmatmul.bf16.vlgmr.msrb.gmra.mxu3 %v5064_v55  ;;  %v3711_v19 = vld [vmem:[#allocation5 + $0x570] sm:$0xf0]  ;;  %v3586_v21 = vor.u32 %v4587_v13, %v3583_v14  ;;  %v4551_v23 = vld [vmem:[#allocation5 + $0x344] sm:$0xf]  ;;  %v4510_v11 = vld [vmem:[#allocation5 + $0x1f4] sm:$0xf0] }
  0x62   :  { %1463 = vmatpush.bf16.msra.mxu3 %v3650_v29  ;;  %v3311_v22 = vld [vmem:[#allocation5 + $0x250] sm:$0xf0]  ;;  %v4583_v25 = vld [vmem:[#allocation5 + $0x444] sm:$0xf]  ;;  %v3714_v27 = vor.u32 %v4619_v18, %v3711_v19  ;;  %v3125_v14 = vld [vmem:[#allocation5 + $0xc8] sm:$0xf]  ;;  %v3270_v19 = vor.u32 %v4510_v11, %v3269_v10 }
  0x63   :  { %1438 = vmatpush.bf16.msra.mxu0 %v3378_v39  ;;  %v3439_v24 = vld [vmem:[#allocation5 + $0x350] sm:$0xf0]  ;;  %v3314_v28 = vor.u32 %v4519_v20, %v3311_v22  ;;  %v4615_v31 = vld [vmem:[#allocation5 + $0x544] sm:$0xf]  ;;  %v4538_v18 = vld [vmem:[#allocation5 + $0x2d4] sm:$0xf0] }
  0x64   :  { %1451 = vmatpush.bf16.msra.mxu1 %v3506_v40  ;;  %1432 = vmatmul.bf16.vlgmr.msra.gmra.mxu2 %v5070_v7  ;;  %v3567_v26 = vld [vmem:[#allocation5 + $0x450] sm:$0xf0]  ;;  %v3442_v29 = vor.u32 %v4551_v23, %v3439_v24  ;;  %v4515_v33 = vld [vmem:[#allocation5 + $0x224] sm:$0xf]  ;;  %v3509_v20 = vld [vmem:[#allocation5 + $0x3c8] sm:$0xf] }
  0x65   :  { %1476 = vmatpush.bf16.msrb.mxu2 %v3778_v38  ;;  %v3695_v32 = vld [vmem:[#allocation5 + $0x550] sm:$0xf0]  ;;  %v3570_v34 = vor.u32 %v4583_v25, %v3567_v26  ;;  %v4547_v37 = vld [vmem:[#allocation5 + $0x324] sm:$0xf]  ;;  %v3253_v23 = vld [vmem:[#allocation5 + $0x1c8] sm:$0xf] }
  0x66   :  { %1464 = vmatpush.bf16.msra.mxu3 %v3634_v44  ;;  %v3295_v36 = vld [vmem:[#allocation5 + $0x230] sm:$0xf0]  ;;  %v4579_v39 = vld [vmem:[#allocation5 + $0x424] sm:$0xf]  ;;  %v3698_v41 = vor.u32 %v4615_v31, %v3695_v32  ;;  %v4506_v24 = vld [vmem:[#allocation5 + $0x1d4] sm:$0xf0] }
  0x67   :  { %1439 = vmatpush.bf16.msra.mxu0 %v3362_v53  ;;  %v3423_v38 = vld [vmem:[#allocation5 + $0x330] sm:$0xf0]  ;;  %v4611_v42 = vld [vmem:[#allocation5 + $0x524] sm:$0xf]  ;;  %v3298_v46 = vor.u32 %v4515_v33, %v3295_v36  ;;  %v3109_v26 = vld [vmem:[#allocation5 + $0xa8] sm:$0xf]  ;;  %v3254_v32 = vor.u32 %v4506_v24, %v3253_v23 }
  0x68   :  { %1452 = vmatpush.bf16.msra.mxu1 %v3490_v54  ;;  %v3551_v40 = vld [vmem:[#allocation5 + $0x430] sm:$0xf0]  ;;  %v4511_v44 = vld [vmem:[#allocation5 + $0x204] sm:$0xf]  ;;  %v3426_v47 = vor.u32 %v4547_v37, %v3423_v38  ;;  %v4534_v31 = vld [vmem:[#allocation5 + $0x2b4] sm:$0xf0] }
  0x69   :  { %1477 = vmatpush.bf16.msrb.mxu2 %v3762_v52  ;;  %v3679_v43 = vld [vmem:[#allocation5 + $0x530] sm:$0xf0]  ;;  %v4543_v49 = vld [vmem:[#allocation5 + $0x304] sm:$0xf]  ;;  %v3554_v52 = vor.u32 %v4579_v39, %v3551_v40  ;;  %v3493_v33 = vld [vmem:[#allocation5 + $0x3a8] sm:$0xf] }
  0x6a   :  { %1465 = vmatpush.bf16.msra.mxu3 %v3618_v60  ;;  %v3279_v48 = vld [vmem:[#allocation5 + $0x210] sm:$0xf0]  ;;  %v4575_v53 = vld [vmem:[#allocation5 + $0x404] sm:$0xf]  ;;  %v3682_v60 = vor.u32 %v4611_v42, %v3679_v43  ;;  %v3237_v37 = vld [vmem:[#allocation5 + $0x1a8] sm:$0xf] }
  0x6b   :  { %1440 = vmatpush.bf16.msra.mxu0 %v3346_v3  ;;  %v3407_v50 = vld [vmem:[#allocation5 + $0x310] sm:$0xf0]  ;;  %v4639_v59 = vld [vmem:[#allocation5 + $0x604] sm:$0xf]  ;;  %v3282_v0 = vor.u32 %v4511_v44, %v3279_v48  ;;  %v4502_v38 = vld [vmem:[#allocation5 + $0x1b4] sm:$0xf0] }
  0x6c   :  { %1453 = vmatpush.bf16.msra.mxu1 %v3474_v4  ;;  %v3535_v54 = vld [vmem:[#allocation5 + $0x410] sm:$0xf0]  ;;  %v3410_v1 = vor.u32 %v4543_v49, %v3407_v50  ;;  %v3093_v40 = vld [vmem:[#allocation5 + $0x88] sm:$0xf]  ;;  %v4530_v44 = vld [vmem:[#allocation5 + $0x294] sm:$0xf0] }
  0x6d   :  { %1478 = vmatpush.bf16.msrb.mxu2 %v3746_v2  ;;  %v3791_v61 = vld [vmem:[#allocation5 + $0x610] sm:$0xf0]  ;;  %v4607_v2 = vld [vmem:[#allocation5 + $0x504] sm:$0xf]  ;;  %v3538_v4 = vor.u32 %v4575_v53, %v3535_v54  ;;  %v3349_v43 = vld [vmem:[#allocation5 + $0x288] sm:$0xf] }
  0x6e   :  { %1466 = vmatpush.bf16.msra.mxu3 %v3602_v9  ;;  %v3663_v3 = vld [vmem:[#allocation5 + $0x510] sm:$0xf0]  ;;  %v3794_v9 = vor.u32 %v4639_v59, %v3791_v61  ;;  %v4562_v48 = vld [vmem:[#allocation5 + $0x394] sm:$0xf0]  ;;  %v3221_v50 = vld [vmem:[#allocation5 + $0x188] sm:$0xf]  ;;  %v3350_v53 = vor.u32 %v4530_v44, %v3349_v43 }
  0x6f   :  { %1441 = vmatpush.bf16.msra.mxu0 %v3330_v16  ;;  %v3666_v13 = vor.u32 %v4607_v2, %v3663_v3  ;;  %v3526_v16 = vor.u32 %v4574_v8, %v3525_v6  ;;  %v3077_v54 = vld [vmem:[#allocation5 + $0x68] sm:$0xf]  ;;  %v4462_v56 = vld [vmem:[#allocation5 + $0x74] sm:$0xf0] }
  0x70   :  { %1454 = vmatpush.bf16.msra.mxu1 %v3458_v17  ;;  %v3381_v17 = vld [vmem:[#allocation5 + $0x2c8] sm:$0xf]  ;;  %v4558_v63 = vld [vmem:[#allocation5 + $0x374] sm:$0xf0] }
  0x71   :  { %1479 = vmatpush.bf16.msrb.mxu2 %v3730_v15  ;;  %v4474_v15 = vld [vmem:[#allocation5 + $0xd4] sm:$0xf0]  ;;  %v3382_v25 = vor.u32 %v4538_v18, %v3381_v17  ;;  %v3333_v59 = vld [vmem:[#allocation5 + $0x268] sm:$0xf] }
  0x72   :  { %1467 = vmatpush.bf16.msra.mxu3 %v3586_v21  ;;  %v4570_v21 = vld [vmem:[#allocation5 + $0x3d4] sm:$0xf0]  ;;  %v3126_v22 = vor.u32 %v4474_v15, %v3125_v14  ;;  %v3461_v62 = vld [vmem:[#allocation5 + $0x368] sm:$0xf] }
  0x73   :  { %1442 = vmatpush.bf16.msra.mxu0 %v3314_v28  ;;  %v3510_v28 = vor.u32 %v4570_v21, %v3509_v20  ;;  %v4494_v2 = vld [vmem:[#allocation5 + $0x174] sm:$0xf0]  ;;  %v3462_v6 = vor.u32 %v4558_v63, %v3461_v62  ;;  %v3317_v8 = vld [vmem:[#allocation5 + $0x248] sm:$0xf] }
  0x74   :  { %1455 = vmatpush.bf16.msra.mxu1 %v3442_v29  ;;  %v3365_v29 = vld [vmem:[#allocation5 + $0x2a8] sm:$0xf]  ;;  %v4490_v15 = vld [vmem:[#allocation5 + $0x154] sm:$0xf0] }
  0x75   :  { %1480 = vmatpush.bf16.msrb.mxu2 %v3714_v27  ;;  %v4470_v27 = vld [vmem:[#allocation5 + $0xb4] sm:$0xf0]  ;;  %v3366_v39 = vor.u32 %v4534_v31, %v3365_v29  ;;  %v3445_v11 = vld [vmem:[#allocation5 + $0x348] sm:$0xf] }
  0x76   :  { %1468 = vmatpush.bf16.msra.mxu3 %v3570_v34  ;;  %v4566_v34 = vld [vmem:[#allocation5 + $0x3b4] sm:$0xf0]  ;;  %v3110_v36 = vor.u32 %v4470_v27, %v3109_v26  ;;  %v3189_v14 = vld [vmem:[#allocation5 + $0x148] sm:$0xf] }
  0x77   :  { %1443 = vmatpush.bf16.msra.mxu0 %v3298_v46  ;;  %v3494_v42 = vor.u32 %v4566_v34, %v3493_v33  ;;  %v3238_v46 = vor.u32 %v4502_v38, %v3237_v37  ;;  %v3045_v17 = vld [vmem:[#allocation5 + $0x28] sm:$0xf]  ;;  %v4454_v18 = vld [vmem:[#allocation5 + $0x34] sm:$0xf0] }
  0x78   :  { %1456 = vmatpush.bf16.msra.mxu1 %v3426_v47  ;;  %v3477_v47 = vld [vmem:[#allocation5 + $0x388] sm:$0xf]  ;;  %v4518_v21 = vld [vmem:[#allocation5 + $0x234] sm:$0xf0] }
  0x79   :  { %1481 = vmatpush.bf16.msrb.mxu2 %v3698_v41  ;;  %v4466_v41 = vld [vmem:[#allocation5 + $0x94] sm:$0xf0]  ;;  %v3478_v58 = vor.u32 %v4562_v48, %v3477_v47  ;;  %v3301_v20 = vld [vmem:[#allocation5 + $0x228] sm:$0xf]  ;;  %v4476_v47 = vld [vmem:[#allocation5 + $0xec] sm:$0xf] }
  0x7a   :  { %1469 = vmatpush.bf16.msra.mxu3 %v3554_v52  ;;  %v3094_v49 = vor.u32 %v4466_v41, %v3093_v40  ;;  %v4498_v52 = vld [vmem:[#allocation5 + $0x194] sm:$0xf0]  ;;  %v3429_v23 = vld [vmem:[#allocation5 + $0x328] sm:$0xf]  ;;  %v3302_v29 = vor.u32 %v4518_v21, %v3301_v20  ;;  %v3143_v48 = vld [vmem:[#allocation5 + $0xf8] sm:$0xf0] }
  0x7b   :  { %1444 = vmatpush.bf16.msra.mxu0 %v3282_v0  ;;  %v3222_v61 = vor.u32 %v4498_v52, %v3221_v50  ;;  %v3078_v0 = vor.u32 %v4462_v56, %v3077_v54  ;;  %v4550_v24 = vld [vmem:[#allocation5 + $0x334] sm:$0xf0]  ;;  %v3173_v26 = vld [vmem:[#allocation5 + $0x128] sm:$0xf]  ;;  %v3146_v63 = vor.u32 %v4476_v47, %v3143_v48 }
  0x7c   :  { %1457 = vmatpush.bf16.msra.mxu1 %v3410_v1  ;;  %v3205_v1 = vld [vmem:[#allocation5 + $0x168] sm:$0xf]  ;;  %v4486_v27 = vld [vmem:[#allocation5 + $0x134] sm:$0xf0]  ;;  %v3430_v34 = vor.u32 %v4550_v24, %v3429_v23  ;;  %v3239_v23 = vld [vmem:[#allocation5 + $0x1b8] sm:$0xf0] }
  0x7d   :  { %1482 = vmatpush.bf16.msrb.mxu2 %v3682_v60  ;;  %v4526_v60 = vld [vmem:[#allocation5 + $0x274] sm:$0xf0]  ;;  %v3206_v10 = vor.u32 %v4494_v2, %v3205_v1  ;;  %v3285_v37 = vld [vmem:[#allocation5 + $0x208] sm:$0xf]  ;;  %v3174_v40 = vor.u32 %v4486_v27, %v3173_v26  ;;  %v4472_v1 = vld [vmem:[#allocation5 + $0xcc] sm:$0xf] }
  0x7e   :  { %1470 = vmatpush.bf16.msra.mxu3 %v3538_v4  ;;  %1445 = vmatmul.bf16.vlgmr.msra.gmra.mxu0 %v5062_v51  ;;  %v3334_v3 = vor.u32 %v4526_v60, %v3333_v59  ;;  %v3061_v4 = vld [vmem:[#allocation5 + $0x48] sm:$0xf]  ;;  %v4450_v31 = vld [vmem:[#allocation5 + $0x14] sm:$0xf0]  ;;  %v4508_v60 = vld [vmem:[#allocation5 + $0x1ec] sm:$0xf] }
  0x7f   :  { %1528 = vmatpush.bf16.msrb.mxu0 %v3398_v12  ;;  %1458 = vmatmul.bf16.vlgmr.msra.gmra.mxu1 %v5066_v57  ;;  %v4554_v12 = vld [vmem:[#allocation5 + $0x354] sm:$0xf0]  ;;  %v3781_v52 = vld [vmem:[#allocation5 + $0x5e8] sm:$0xf]  ;;  %v3127_v2 = vld [vmem:[#allocation5 + $0xd8] sm:$0xf0] }
  0x80   :  { %1502 = vmatpush.bf16.msrb.mxu1 %v3142_v5  ;;  %v4458_v5 = vld [vmem:[#allocation5 + $0x54] sm:$0xf0]  ;;  %v3637_v54 = vld [vmem:[#allocation5 + $0x4c8] sm:$0xf]  ;;  %v4464_v26 = vld [vmem:[#allocation5 + $0x8c] sm:$0xf] }
  0x81   :  { %1483 = vmatpush.bf16.msrb.mxu2 %v3666_v13  ;;  %1471 = vmatmul.bf16.vlgmr.msra.gmra.mxu3 %v5078_v30  ;;  %v3062_v13 = vor.u32 %v4458_v5, %v3061_v4  ;;  %v4606_v33 = vld [vmem:[#allocation5 + $0x4f4] sm:$0xf0]  ;;  %v3765_v5 = vld [vmem:[#allocation5 + $0x5c8] sm:$0xf]  ;;  %v3095_v27 = vld [vmem:[#allocation5 + $0x98] sm:$0xf0] }
  0x82   :  { %1496 = vmatpush.bf16.msrb.mxu3 %v3794_v9  ;;  %v4522_v9 = vld [vmem:[#allocation5 + $0x254] sm:$0xf0]  ;;  %v3605_v20 = vld [vmem:[#allocation5 + $0x488] sm:$0xf] }
  0x83   :  { %1529 = vmatpush.bf16.msrb.mxu0 %v3382_v25  ;;  %v3046_v25 = vor.u32 %v4454_v18, %v3045_v17  ;;  %v4514_v38 = vld [vmem:[#allocation5 + $0x214] sm:$0xf0]  ;;  %v3749_v18 = vld [vmem:[#allocation5 + $0x5a8] sm:$0xf] }
  0x84   :  { %1503 = vmatpush.bf16.msrb.mxu1 %v3126_v22  ;;  %1484 = vmatmul.bf16.vlgmr.msrb.gmra.mxu2 %v5080_v35  ;;  %v3190_v22 = vor.u32 %v4490_v15, %v3189_v14  ;;  %v4546_v41 = vld [vmem:[#allocation5 + $0x314] sm:$0xf0]  ;;  %v3286_v50 = vor.u32 %v4514_v38, %v3285_v37  ;;  %v4468_v14 = vld [vmem:[#allocation5 + $0xac] sm:$0xf]  ;;  %v3111_v15 = vld [vmem:[#allocation5 + $0xb8] sm:$0xf0]  ;;  %v3098_v38 = vor.u32 %v4464_v26, %v3095_v27 }
  0x85   :  { %1541 = vmatpush.bf16.msra.mxu2 %v3526_v16  ;;  %v3318_v16 = vor.u32 %v4522_v9, %v3317_v8  ;;  %v4642_v43 = vld [vmem:[#allocation5 + $0x614] sm:$0xf0]  ;;  %v3621_v8 = vld [vmem:[#allocation5 + $0x4a8] sm:$0xf]  ;;  %v3114_v24 = vor.u32 %v4468_v14, %v3111_v15  ;;  %v3223_v37 = vld [vmem:[#allocation5 + $0x198] sm:$0xf0] }
  0x86   :  { %1515 = vmatpush.bf16.msra.mxu3 %v3270_v19  ;;  %v3446_v19 = vor.u32 %v4554_v12, %v3445_v11  ;;  %v4598_v9 = vld [vmem:[#allocation5 + $0x4b4] sm:$0xf0]  ;;  %v3255_v11 = vld [vmem:[#allocation5 + $0x1d8] sm:$0xf0]  ;;  %v3130_v12 = vor.u32 %v4472_v1, %v3127_v2  ;;  %v3573_v47 = vld [vmem:[#allocation5 + $0x448] sm:$0xf] }
  0x87   :  { %1530 = vmatpush.bf16.msrb.mxu0 %v3366_v39  ;;  %v3413_v39 = vld [vmem:[#allocation5 + $0x308] sm:$0xf]  ;;  %v4594_v21 = vld [vmem:[#allocation5 + $0x494] sm:$0xf0]  ;;  %v3191_v1 = vld [vmem:[#allocation5 + $0x158] sm:$0xf0] }
  0x88   :  { %1504 = vmatpush.bf16.msrb.mxu1 %v3110_v36  ;;  %v3157_v36 = vld [vmem:[#allocation5 + $0x108] sm:$0xf]  ;;  %v3414_v56 = vor.u32 %v4546_v41, %v3413_v39  ;;  %v3079_v41 = vld [vmem:[#allocation5 + $0x78] sm:$0xf0]  ;;  %v4586_v48 = vld [vmem:[#allocation5 + $0x454] sm:$0xf0] }
  0x89   :  { %1542 = vmatpush.bf16.msra.mxu2 %v3510_v28  ;;  %v3029_v28 = vld [vmem:[#allocation5 + $0x8] sm:$0xf]  ;;  %v3175_v14 = vld [vmem:[#allocation5 + $0x138] sm:$0xf0] }
  0x8a   :  { %1516 = vmatpush.bf16.msra.mxu3 %v3254_v32  ;;  %v3653_v32 = vld [vmem:[#allocation5 + $0x4e8] sm:$0xf]  ;;  %v3030_v44 = vor.u32 %v4450_v31, %v3029_v28  ;;  %v3606_v28 = vor.u32 %v4594_v21, %v3605_v20  ;;  %v4448_v20 = vld [vmem:[#allocation5 + $0xc] sm:$0xf]  ;;  %v3031_v21 = vld [vmem:[#allocation5 + $0x18] sm:$0xf0] }
  0x8b   :  { %1531 = vmatpush.bf16.msrb.mxu0 %v3350_v53  ;;  %v4638_v53 = vld [vmem:[#allocation5 + $0x5f4] sm:$0xf0]  ;;  %v3733_v31 = vld [vmem:[#allocation5 + $0x588] sm:$0xf]  ;;  %v3527_v26 = vld [vmem:[#allocation5 + $0x3f8] sm:$0xf0] }
  0x8c   :  { %1505 = vmatpush.bf16.msrb.mxu1 %v3094_v49  ;;  %v3654_v49 = vor.u32 %v4606_v33, %v3653_v32  ;;  %v4626_v32 = vld [vmem:[#allocation5 + $0x594] sm:$0xf0]  ;;  %v3589_v33 = vld [vmem:[#allocation5 + $0x468] sm:$0xf] }
  0x8d   :  { %1543 = vmatpush.bf16.msra.mxu2 %v3494_v42  ;;  %v3797_v42 = vld [vmem:[#allocation5 + $0x608] sm:$0xf]  ;;  %v3734_v39 = vor.u32 %v4626_v32, %v3733_v31  ;;  %v4536_v31 = vld [vmem:[#allocation5 + $0x2cc] sm:$0xf]  ;;  %v3034_v32 = vor.u32 %v4448_v20, %v3031_v21 }
  0x8e   :  { %1517 = vmatpush.bf16.msra.mxu3 %v3238_v46  ;;  %v4482_v46 = vld [vmem:[#allocation5 + $0x114] sm:$0xf0]  ;;  %v3798_v59 = vor.u32 %v4642_v43, %v3797_v42  ;;  %v4556_v20 = vld [vmem:[#allocation5 + $0x36c] sm:$0xf] }
  0x8f   :  { %1532 = vmatpush.bf16.msrb.mxu0 %v3334_v3  ;;  %v3158_v62 = vor.u32 %v4482_v46, %v3157_v36  ;;  %v4496_v36 = vld [vmem:[#allocation5 + $0x18c] sm:$0xf]  ;;  %v4622_v46 = vld [vmem:[#allocation5 + $0x574] sm:$0xf0] }
  0x90   :  { %1506 = vmatpush.bf16.msrb.mxu1 %v3078_v0  ;;  %v3782_v0 = vor.u32 %v4638_v53, %v3781_v52  ;;  %v3226_v43 = vor.u32 %v4496_v36, %v3223_v37  ;;  %v3159_v36 = vld [vmem:[#allocation5 + $0x118] sm:$0xf0] }
  0x91   :  { %1544 = vmatpush.bf16.msra.mxu2 %v3478_v58  ;;  %3804 = vmatmul.msk.bf16.vlgmr.msrb.gmra.mxu3 %vm1316_vm0, %v5074_v45  ;;  %v4602_v58 = vld [vmem:[#allocation5 + $0x4d4] sm:$0xf0] }
  0x92   :  { %1518 = vmatpush.bf16.msra.mxu3 %v3222_v61  ;;  %v3271_v61 = vld [vmem:[#allocation5 + $0x1f8] sm:$0xf0]  ;;  %v3638_v3 = vor.u32 %v4602_v58, %v3637_v54  ;;  %v4456_v54 = vld [vmem:[#allocation5 + $0x4c] sm:$0xf]  ;;  %v3574_v58 = vor.u32 %v4586_v48, %v3573_v47 }
  0x93   :  { %1533 = vmatpush.bf16.msrb.mxu0 %v3318_v16  ;;  %v3274_v4 = vor.u32 %v4508_v60, %v3271_v61  ;;  %v3622_v16 = vor.u32 %v4598_v9, %v3621_v8  ;;  %v3701_v60 = vld [vmem:[#allocation5 + $0x548] sm:$0xf]  ;;  %v4618_v61 = vld [vmem:[#allocation5 + $0x554] sm:$0xf0]  ;;  %v4600_v47 = vld [vmem:[#allocation5 + $0x4cc] sm:$0xf] }
  0x94   :  { %1507 = vmatpush.bf16.msrb.mxu1 %v3062_v13  ;;  %v3685_v9 = vld [vmem:[#allocation5 + $0x528] sm:$0xf]  ;;  %v3639_v48 = vld [vmem:[#allocation5 + $0x4d8] sm:$0xf0] }
  0x95   :  { %1545 = vmatpush.bf16.msra.mxu2 %v3462_v6  ;;  %v4634_v6 = vld [vmem:[#allocation5 + $0x5d4] sm:$0xf0] }
  0x96   :  { %1519 = vmatpush.bf16.msra.mxu3 %v3206_v10  ;;  %v4504_v10 = vld [vmem:[#allocation5 + $0x1cc] sm:$0xf]  ;;  %v3766_v13 = vor.u32 %v4634_v6, %v3765_v5  ;;  %v3047_v5 = vld [vmem:[#allocation5 + $0x38] sm:$0xf0] }
  0x97   :  { %1534 = vmatpush.bf16.msrb.mxu0 %v3302_v29  ;;  %v3258_v17 = vor.u32 %v4504_v10, %v3255_v11  ;;  %v4614_v10 = vld [vmem:[#allocation5 + $0x534] sm:$0xf0]  ;;  %v3541_v11 = vld [vmem:[#allocation5 + $0x408] sm:$0xf] }
  0x98   :  { %1508 = vmatpush.bf16.msrb.mxu1 %v3046_v25 }
  0x99   :  { %1546 = vmatpush.bf16.msra.mxu2 %v3446_v19  ;;  %v4630_v19 = vld [vmem:[#allocation5 + $0x5b4] sm:$0xf0] }
  0x9a   :  { %1520 = vmatpush.bf16.msra.mxu3 %v3190_v22  ;;  %v4500_v22 = vld [vmem:[#allocation5 + $0x1ac] sm:$0xf]  ;;  %v3750_v25 = vor.u32 %v4630_v19, %v3749_v18  ;;  %v3686_v18 = vor.u32 %v4614_v10, %v3685_v9  ;;  %v3669_v19 = vld [vmem:[#allocation5 + $0x508] sm:$0xf]  ;;  %v3479_v10 = vld [vmem:[#allocation5 + $0x398] sm:$0xf0] }
  0x9b   :  { %1535 = vmatpush.bf16.msrb.mxu0 %v3286_v50  ;;  %v3242_v29 = vor.u32 %v4500_v22, %v3239_v23  ;;  %v3207_v50 = vld [vmem:[#allocation5 + $0x178] sm:$0xf0] }
  0x9c   :  { %1509 = vmatpush.bf16.msrb.mxu1 %v3030_v44  ;;  %v3717_v44 = vld [vmem:[#allocation5 + $0x568] sm:$0xf] }
  0x9d   :  { %1547 = vmatpush.bf16.msra.mxu2 %v3430_v34  ;;  %v4590_v34 = vld [vmem:[#allocation5 + $0x474] sm:$0xf0]  ;;  %v3718_v53 = vor.u32 %v4622_v46, %v3717_v44  ;;  %v3511_v46 = vld [vmem:[#allocation5 + $0x3d8] sm:$0xf0] }
  0x9e   :  { %1521 = vmatpush.bf16.msra.mxu3 %v3174_v40  ;;  %1536 = vmatmul.bf16.vlgmr.msrb.gmra.mxu0 %v5062_v51  ;;  %v4460_v40 = vld [vmem:[#allocation5 + $0x6c] sm:$0xf]  ;;  %v3590_v42 = vor.u32 %v4590_v34, %v3589_v33  ;;  %v3383_v33 = vld [vmem:[#allocation5 + $0x2d8] sm:$0xf0] }
  0x9f   :  { %1587 = vmatpush.bf16.msra.mxu0 %v3798_v59  ;;  %1510 = vmatmul.bf16.vlgmr.msrb.gmra.mxu1 %v5064_v55  ;;  %v3082_v52 = vor.u32 %v4460_v40, %v3079_v41  ;;  %v4480_v34 = vld [vmem:[#allocation5 + $0x10c] sm:$0xf] }
  0xa0   :  { %1554 = vmatpush.bf16.msra.mxu1 %v3654_v49  ;;  %v4492_v49 = vld [vmem:[#allocation5 + $0x16c] sm:$0xf]  ;;  %v3162_v44 = vor.u32 %v4480_v34, %v3159_v36 }
  0xa1   :  { %1548 = vmatpush.bf16.msra.mxu2 %v3414_v56  ;;  %v3063_v56 = vld [vmem:[#allocation5 + $0x58] sm:$0xf0]  ;;  %v3210_v59 = vor.u32 %v4492_v49, %v3207_v50  ;;  %v4532_v50 = vld [vmem:[#allocation5 + $0x2ac] sm:$0xf] }
  0xa2   :  { %1522 = vmatpush.bf16.msra.mxu3 %v3158_v62  ;;  %v3557_v62 = vld [vmem:[#allocation5 + $0x428] sm:$0xf]  ;;  %v3066_v2 = vor.u32 %v4456_v54, %v3063_v56  ;;  %v3767_v54 = vld [vmem:[#allocation5 + $0x5d8] sm:$0xf0]  ;;  %v4552_v34 = vld [vmem:[#allocation5 + $0x34c] sm:$0xf] }
  0xa3   :  { %1606 = vmatpush.bf16.msrb.mxu0 %v3274_v4  ;;  %v4452_v4 = vld [vmem:[#allocation5 + $0x2c] sm:$0xf] }
  0xa4   :  { %1555 = vmatpush.bf16.msra.mxu1 %v3638_v3  ;;  %1549 = vmatmul.bf16.vlgmr.msra.gmra.mxu2 %v5066_v57  ;;  %v3702_v3 = vor.u32 %v4618_v61, %v3701_v60  ;;  %v3050_v15 = vor.u32 %v4452_v4, %v3047_v5  ;;  %v3495_v61 = vld [vmem:[#allocation5 + $0x3b8] sm:$0xf0] }
  0xa5   :  { %1593 = vmatpush.bf16.msrb.mxu2 %v3146_v63  ;;  %1523 = vmatmul.bf16.vlgmr.msra.gmra.mxu3 %v5070_v7  ;;  %v4582_v63 = vld [vmem:[#allocation5 + $0x434] sm:$0xf0]  ;;  %v3751_v4 = vld [vmem:[#allocation5 + $0x5b8] sm:$0xf0] }
  0xa6   :  { %1567 = vmatpush.bf16.msrb.mxu3 %v3782_v0  ;;  %v4488_v0 = vld [vmem:[#allocation5 + $0x14c] sm:$0xf]  ;;  %v3558_v6 = vor.u32 %v4582_v63, %v3557_v62  ;;  %v3623_v63 = vld [vmem:[#allocation5 + $0x4b8] sm:$0xf0] }
  0xa7   :  { %1607 = vmatpush.bf16.msrb.mxu0 %v3258_v17  ;;  %v3194_v8 = vor.u32 %v4488_v0, %v3191_v1  ;;  %v3399_v17 = vld [vmem:[#allocation5 + $0x2f8] sm:$0xf0]  ;;  %v4596_v62 = vld [vmem:[#allocation5 + $0x4ac] sm:$0xf] }
  0xa8   :  { %1556 = vmatpush.bf16.msra.mxu1 %v3622_v16  ;;  %v4540_v16 = vld [vmem:[#allocation5 + $0x2ec] sm:$0xf] }
  0xa9   :  { %1594 = vmatpush.bf16.msrb.mxu2 %v3130_v12  ;;  %v4578_v12 = vld [vmem:[#allocation5 + $0x414] sm:$0xf0]  ;;  %v3402_v27 = vor.u32 %v4540_v16, %v3399_v17  ;;  %v4528_v1 = vld [vmem:[#allocation5 + $0x28c] sm:$0xf]  ;;  %v3735_v17 = vld [vmem:[#allocation5 + $0x598] sm:$0xf0] }
  0xaa   :  { %1568 = vmatpush.bf16.msrb.mxu3 %v3766_v13  ;;  %v4484_v13 = vld [vmem:[#allocation5 + $0x12c] sm:$0xf]  ;;  %v3542_v22 = vor.u32 %v4578_v12, %v3541_v11  ;;  %v3607_v12 = vld [vmem:[#allocation5 + $0x498] sm:$0xf0] }
  0xab   :  { %1608 = vmatpush.bf16.msrb.mxu0 %v3242_v29  ;;  %v3178_v23 = vor.u32 %v4484_v13, %v3175_v14  ;;  %v3655_v29 = vld [vmem:[#allocation5 + $0x4f8] sm:$0xf0]  ;;  %v4592_v11 = vld [vmem:[#allocation5 + $0x48c] sm:$0xf] }
  0xac   :  { %1557 = vmatpush.bf16.msra.mxu1 %v3606_v28  ;;  %v4604_v28 = vld [vmem:[#allocation5 + $0x4ec] sm:$0xf] }
  0xad   :  { %1595 = vmatpush.bf16.msrb.mxu2 %v3114_v24  ;;  %v4610_v24 = vld [vmem:[#allocation5 + $0x514] sm:$0xf0]  ;;  %v3658_v41 = vor.u32 %v4604_v28, %v3655_v29  ;;  %v4524_v14 = vld [vmem:[#allocation5 + $0x26c] sm:$0xf]  ;;  %v3719_v29 = vld [vmem:[#allocation5 + $0x578] sm:$0xf0] }
  0xae   :  { %1569 = vmatpush.bf16.msrb.mxu3 %v3750_v25  ;;  %3805 = vmatmul.msk.bf16.vlgmr.msra.gmra.mxu0 %vm1316_vm0, %v5074_v45  ;;  %v4572_v25 = vld [vmem:[#allocation5 + $0x3ec] sm:$0xf]  ;;  %v3670_v37 = vor.u32 %v4610_v24, %v3669_v19  ;;  %v3610_v19 = vor.u32 %v4592_v11, %v3607_v12  ;;  %v3591_v24 = vld [vmem:[#allocation5 + $0x478] sm:$0xf0] }
  0xaf   :  { %1609 = vmatpush.bf16.msrb.mxu0 %v3226_v43  ;;  %v3530_v40 = vor.u32 %v4572_v25, %v3527_v26  ;;  %v3386_v43 = vor.u32 %v4536_v31, %v3383_v33  ;;  %v4520_v26 = vld [vmem:[#allocation5 + $0x24c] sm:$0xf]  ;;  %v3543_v11 = vld [vmem:[#allocation5 + $0x418] sm:$0xf0] }
  0xb0   :  { %1558 = vmatpush.bf16.msra.mxu1 %v3590_v42  ;;  %v4568_v42 = vld [vmem:[#allocation5 + $0x3cc] sm:$0xf] }
  0xb1   :  { %1596 = vmatpush.bf16.msrb.mxu2 %v3098_v38  ;;  %v4636_v38 = vld [vmem:[#allocation5 + $0x5ec] sm:$0xf]  ;;  %v3514_v56 = vor.u32 %v4568_v42, %v3511_v46 }
  0xb2   :  { %1570 = vmatpush.bf16.msrb.mxu3 %v3734_v39  ;;  %v3783_v39 = vld [vmem:[#allocation5 + $0x5f8] sm:$0xf0]  ;;  %v4620_v28 = vld [vmem:[#allocation5 + $0x56c] sm:$0xf] }
  0xb3   :  { %1610 = vmatpush.bf16.msrb.mxu0 %v3210_v59  ;;  %v3786_v49 = vor.u32 %v4636_v38, %v3783_v39  ;;  %v4564_v59 = vld [vmem:[#allocation5 + $0x3ac] sm:$0xf]  ;;  %v3447_v38 = vld [vmem:[#allocation5 + $0x358] sm:$0xf0] }
  0xb4   :  { %1559 = vmatpush.bf16.msra.mxu1 %v3574_v58  ;;  %v3642_v58 = vor.u32 %v4600_v47, %v3639_v48  ;;  %v3498_v5 = vor.u32 %v4564_v59, %v3495_v61  ;;  %v4584_v39 = vld [vmem:[#allocation5 + $0x44c] sm:$0xf]  ;;  %v3703_v47 = vld [vmem:[#allocation5 + $0x558] sm:$0xf0]  ;;  %v3450_v48 = vor.u32 %v4552_v34, %v3447_v38  ;;  %v3889_v38 = vld [vmem:[#allocation8 + $0xa0] sm:$0xf] }
  0xb5   :  { %1597 = vmatpush.bf16.msrb.mxu2 %v3082_v52  ;;  %v3367_v52 = vld [vmem:[#allocation5 + $0x2b8] sm:$0xf0]  ;;  %v4516_v42 = vld [vmem:[#allocation5 + $0x22c] sm:$0xf] }
  0xb6   :  { %1571 = vmatpush.bf16.msrb.mxu3 %v3718_v53  ;;  %v4632_v53 = vld [vmem:[#allocation5 + $0x5cc] sm:$0xf]  ;;  %v3370_v60 = vor.u32 %v4532_v50, %v3367_v52 }
  0xb7   :  { %1611 = vmatpush.bf16.msrb.mxu0 %v3194_v8  ;;  %v3770_v0 = vor.u32 %v4632_v53, %v3767_v54  ;;  %v4560_v8 = vld [vmem:[#allocation5 + $0x38c] sm:$0xf]  ;;  %v3431_v53 = vld [vmem:[#allocation5 + $0x338] sm:$0xf0] }
  0xb8   :  { %1560 = vmatpush.bf16.msra.mxu1 %v3558_v6  ;;  %v3626_v6 = vor.u32 %v4596_v62, %v3623_v63  ;;  %v4616_v46 = vld [vmem:[#allocation5 + $0x54c] sm:$0xf]  ;;  %v3687_v63 = vld [vmem:[#allocation5 + $0x538] sm:$0xf0] }
  0xb9   :  { %1598 = vmatpush.bf16.msrb.mxu2 %v3066_v2  ;;  %v3351_v2 = vld [vmem:[#allocation5 + $0x298] sm:$0xf0]  ;;  %v4548_v50 = vld [vmem:[#allocation5 + $0x32c] sm:$0xf] }
  0xba   :  { %1572 = vmatpush.bf16.msrb.mxu3 %v3702_v3  ;;  %v4628_v3 = vld [vmem:[#allocation5 + $0x5ac] sm:$0xf]  ;;  %v3354_v9 = vor.u32 %v4528_v1, %v3351_v2  ;;  %v3799_v1 = vld [vmem:[#allocation5 + $0x618] sm:$0xf0]  ;;  %v5110_v2 = vld [vmem:[#allocation7] sm:$0xf] }
  0xbb   :  { %1612 = vmatpush.bf16.msrb.mxu0 %v3178_v23  ;;  %v3754_v13 = vor.u32 %v4628_v3, %v3751_v4  ;;  %v5102_v16 = vpop.f32.mrf.mxu0  ;;  %v4588_v23 = vld [vmem:[#allocation5 + $0x46c] sm:$0xf]  ;;  %v3434_v4 = vor.u32 %v4548_v50, %v3431_v53 }
  0xbc   :  { %1561 = vmatpush.bf16.msra.mxu1 %v3542_v22  ;;  %v3463_v22 = vld [vmem:[#allocation5 + $0x378] sm:$0xf0]  ;;  %v3594_v33 = vor.u32 %v4588_v23, %v3591_v24  ;;  %v4580_v54 = vld [vmem:[#allocation5 + $0x42c] sm:$0xf] }
  0xbd   :  { %1599 = vmatpush.bf16.msrb.mxu2 %v3050_v15  ;;  %v3335_v15 = vld [vmem:[#allocation5 + $0x278] sm:$0xf0]  ;;  %v4512_v59 = vld [vmem:[#allocation5 + $0x20c] sm:$0xf] }
  0xbe   :  { %1573 = vmatpush.bf16.msrb.mxu3 %v3686_v18  ;;  %v3482_v18 = vor.u32 %v4560_v8, %v3479_v10  ;;  %v3338_v21 = vor.u32 %v4524_v14, %v3335_v15  ;;  %v4612_v61 = vld [vmem:[#allocation5 + $0x52c] sm:$0xf]  ;;  %v3921_v14 = vld [vmem:[#allocation8 + $0xe0] sm:$0xf]  ;;  %v4673_v15 = vld [vmem:[#allocation8 + $0xec] sm:$0xf0] }
  0xbf   :  { %1562 = vmatmul.bf16.vlgmr.msra.gmra.mxu1 %v5078_v30  ;;  %1613 = vmatpush.bf16.msrb.mxu0 %v3162_v44  ;;  %v4576_v10 = vld [vmem:[#allocation5 + $0x40c] sm:$0xf]  ;;  %v3922_v24 = vor.u32 %v4673_v15, %v3921_v14  ;;  %v3809_v14 = vld [vmem:[#allocation8] sm:$0xf]  ;;  %v4645_v15 = vld [vmem:[#allocation8 + $0xc] sm:$0xf0] }
  0xc0   :  { %1619 = vmatpush.bf16.msrb.mxu1 %v3402_v27  ;;  %v3319_v27 = vld [vmem:[#allocation5 + $0x258] sm:$0xf0]  ;;  %v3546_v23 = vor.u32 %v4576_v10, %v3543_v11  ;;  %v3953_v11 = vld [vmem:[#allocation8 + $0x120] sm:$0xf] }
  0xc1   :  { %1600 = vmatpush.bf16.msrb.mxu2 %v3034_v32  ;;  %v3466_v32 = vor.u32 %v4556_v20, %v3463_v22  ;;  %v3322_v36 = vor.u32 %v4520_v26, %v3319_v27  ;;  %v4705_v20 = vld [vmem:[#allocation8 + $0x1ec] sm:$0xf0]  ;;  %v3905_v26 = vld [vmem:[#allocation8 + $0xc0] sm:$0xf] }
  0xc2   :  { %1574 = vmatpush.bf16.msrb.mxu3 %v3670_v37  ;;  %1614 = vmatmul.bf16.vlgmr.msrb.gmra.mxu0 %v5070_v7  ;;  %v5104_v25 = vpop.f32.mrf.mxu1  ;;  %v4669_v27 = vld [vmem:[#allocation8 + $0xcc] sm:$0xf0] }
  0xc3   :  { %1658 = vmatpush.bf16.msra.mxu0 %v3786_v49  ;;  %v5106_v31 = vpop.f32.mrf.mxu2  ;;  %v1331_v44 = vpop.f32.mrf.mxu0 }
  0xc4   :  { %1620 = vmatpush.bf16.msrb.mxu1 %v3386_v43  ;;  %1601 = vmatmul.bf16.vlgmr.msrb.gmra.mxu2 %v5064_v55  ;;  %v4624_v55 = vld [vmem:[#allocation5 + $0x58c] sm:$0xf]  ;;  %v3303_v43 = vld [vmem:[#allocation5 + $0x238] sm:$0xf0]  ;;  %v4661_v44 = vld [vmem:[#allocation8 + $0x8c] sm:$0xf0] }
  0xc5   :  { %1645 = vmatpush.bf16.msra.mxu2 %v3658_v41  ;;  %1575 = vmatmul.bf16.vlgmr.msrb.gmra.mxu3 %v5080_v35  ;;  %v3738_v7 = vor.u32 %v4624_v55, %v3735_v17  ;;  %v3722_v41 = vor.u32 %v4620_v28, %v3719_v29  ;;  %v3306_v52 = vor.u32 %v4516_v42, %v3303_v43  ;;  %v4608_v55 = vld [vmem:[#allocation5 + $0x50c] sm:$0xf]  ;;  %v4033_v29 = vld [vmem:[#allocation8 + $0x1c0] sm:$0xf]  ;;  %v4697_v42 = vld [vmem:[#allocation8 + $0x1ac] sm:$0xf0] }
  0xc6   :  { %1632 = vmatpush.bf16.msra.mxu3 %v3530_v40  ;;  %v5108_v37 = vpop.f32.mrf.mxu3  ;;  %v3575_v40 = vld [vmem:[#allocation5 + $0x458] sm:$0xf0] }
  0xc7   :  { %1659 = vmatpush.bf16.msra.mxu0 %v3770_v0  ;;  %v3578_v49 = vor.u32 %v4584_v39, %v3575_v40  ;;  %v4640_v0 = vld [vmem:[#allocation5 + $0x60c] sm:$0xf]  ;;  %v4665_v39 = vld [vmem:[#allocation8 + $0xac] sm:$0xf0] }
  0xc8   :  { %1621 = vmatpush.bf16.msrb.mxu1 %v3370_v60  ;;  %v3287_v60 = vld [vmem:[#allocation5 + $0x218] sm:$0xf0]  ;;  %v3802_v17 = vor.u32 %v4640_v0, %v3799_v1  ;;  %v3969_v0 = vld [vmem:[#allocation8 + $0x140] sm:$0xf]  ;;  %v4685_v1 = vld [vmem:[#allocation8 + $0x14c] sm:$0xf0] }
  0xc9   :  { %1646 = vmatpush.bf16.msra.mxu2 %v3642_v58  ;;  %v3706_v58 = vor.u32 %v4616_v46, %v3703_v47  ;;  %v3290_v8 = vor.u32 %v4512_v59, %v3287_v60  ;;  %v3970_v10 = vor.u32 %v4685_v1, %v3969_v0  ;;  %v4721_v0 = vld [vmem:[#allocation8 + $0x26c] sm:$0xf0]  ;;  %v329_v1 = vperm.slane %v5110_v2, 1 }
  0xca   :  { %1633 = vmatpush.bf16.msra.mxu3 %v3514_v56  ;;  %v3559_v56 = vld [vmem:[#allocation5 + $0x438] sm:$0xf0]  ;;  %v1344_v62 = vpop.f32.mrf.mxu1 }
  0xcb   :  { %1660 = vmatpush.bf16.msra.mxu0 %v3754_v13  ;;  %v1357_v3 = vpop.f32.mrf.mxu2  ;;  %v3690_v13 = vor.u32 %v4612_v61, %v3687_v63  ;;  %v3841_v61 = vld [vmem:[#allocation8 + $0x40] sm:$0xf]  ;;  %v4653_v62 = vld [vmem:[#allocation8 + $0x4c] sm:$0xf0] }
  0xcc   :  { %1622 = vmatpush.bf16.msrb.mxu1 %v3354_v9  ;;  %v3415_v9 = vld [vmem:[#allocation5 + $0x318] sm:$0xf0] }
  0xcd   :  { %1647 = vmatpush.bf16.msra.mxu2 %v3626_v6  ;;  %v4544_v6 = vld [vmem:[#allocation5 + $0x30c] sm:$0xf] }
  0xce   :  { %1634 = vmatpush.bf16.msra.mxu3 %v3498_v5  ;;  %v3562_v5 = vor.u32 %v4580_v54, %v3559_v56  ;;  %v1370_v12 = vpop.f32.mrf.mxu3  ;;  %v3418_v22 = vor.u32 %v4544_v6, %v3415_v9  ;;  %v4657_v54 = vld [vmem:[#allocation8 + $0x6c] sm:$0xf0]  ;;  %v3985_v56 = vld [vmem:[#allocation8 + $0x160] sm:$0xf] }
  0xcf   :  { %1661 = vmatpush.bf16.msra.mxu0 %v3738_v7  ;;  %v4649_v9 = vld [vmem:[#allocation8 + $0x2c] sm:$0xf0] }
  0xd0   :  { %1623 = vmatpush.bf16.msrb.mxu1 %v3338_v21  ;;  %v328_v21 = vperm.slane %v5110_v2, 0  ;;  %v4681_v12 = vld [vmem:[#allocation8 + $0x12c] sm:$0xf0] }
  0xd1   :  { %1648 = vmatpush.bf16.msra.mxu2 %v3610_v19  ;;  %v4049_v19 = vld [vmem:[#allocation8 + $0x1e0] sm:$0xf] }
  0xd2   :  { %1635 = vmatpush.bf16.msra.mxu3 %v3482_v18  ;;  %v3671_v18 = vld [vmem:[#allocation5 + $0x518] sm:$0xf0]  ;;  %v4050_v28 = vor.u32 %v4705_v20, %v4049_v19  ;;  %v4737_v19 = vld [vmem:[#allocation8 + $0x2ec] sm:$0xf0] }
  0xd3   :  { %1662 = vmatpush.bf16.msra.mxu0 %v3722_v41  ;;  %v3674_v7 = vor.u32 %v4608_v55, %v3671_v18  ;;  %v5115_v34 = vpop.f32.mrf.mxu2  ;;  %v4017_v41 = vld [vmem:[#allocation8 + $0x1a0] sm:$0xf] }
  0xd4   :  { %1624 = vmatpush.bf16.msrb.mxu1 %v3322_v36  ;;  %v3906_v36 = vor.u32 %v4669_v27, %v3905_v26  ;;  %v4018_v46 = vor.u32 %v4697_v42, %v4017_v41  ;;  %v4177_v18 = vld [vmem:[#allocation8 + $0x2e0] sm:$0xf]  ;;  %v4051_v26 = vld [vmem:[#allocation8 + $0x1f0] sm:$0xf0]  ;;  %v3810_v27 = vor.u32 %v4645_v15, %v3809_v14  ;;  %v4699_v42 = vld [vmem:[#allocation8 + $0x1c4] sm:$0xf] }
  0xd5   :  { %1649 = vmatpush.bf16.msra.mxu2 %v3594_v33  ;;  %v1330_v33 = vadd.f32 %v5102_v16, %v328_v21  ;;  %v3873_v16 = vld [vmem:[#allocation8 + $0x80] sm:$0xf]  ;;  %v3923_v21 = vld [vmem:[#allocation8 + $0xf0] sm:$0xf0]  ;;  %v4651_v15 = vld [vmem:[#allocation8 + $0x44] sm:$0xf] }
  0xd6   :  { %1636 = vmatpush.bf16.msra.mxu3 %v3466_v32  ;;  %v4701_v32 = vld [vmem:[#allocation8 + $0x1cc] sm:$0xf0]  ;;  %v3874_v53 = vor.u32 %v4661_v44, %v3873_v16  ;;  %v4145_v44 = vld [vmem:[#allocation8 + $0x2a0] sm:$0xf] }
  0xd7   :  { %1663 = vmatpush.bf16.msra.mxu0 %v3706_v58  ;;  %v4034_v40 = vor.u32 %v4701_v32, %v4033_v29  ;;  %v1343_v43 = vadd.f32 %v5104_v25, %v1330_v33  ;;  %v3857_v25 = vld [vmem:[#allocation8 + $0x60] sm:$0xf] }
  0xd8   :  { %1625 = vmatpush.bf16.msrb.mxu1 %v3306_v52  ;;  %v3858_v59 = vor.u32 %v4657_v54, %v3857_v25  ;;  %v4129_v25 = vld [vmem:[#allocation8 + $0x280] sm:$0xf]  ;;  %v4725_v54 = vld [vmem:[#allocation8 + $0x28c] sm:$0xf0] }
  0xd9   :  { %1650 = vmatpush.bf16.msra.mxu2 %v3578_v49  ;;  %v4693_v49 = vld [vmem:[#allocation8 + $0x18c] sm:$0xf0]  ;;  %v1356_v50 = vadd.f32 %v5106_v31, %v1343_v43  ;;  %v4035_v43 = vld [vmem:[#allocation8 + $0x1d0] sm:$0xf0] }
  0xda   :  { %1637 = vmatpush.bf16.msra.mxu3 %v3450_v48  ;;  %v4001_v48 = vld [vmem:[#allocation8 + $0x180] sm:$0xf] }
  0xdb   :  { %1664 = vmatpush.bf16.msra.mxu0 %v3690_v13  ;;  %v1381_v47 = vpop.f32.mrf.mxu0  ;;  %v1409_v52 = vpop.f32.mrf.mxu2  ;;  %v1369_v58 = vadd.f32 %v5108_v37, %v1356_v50 }
  0xdc   :  { %1626 = vmatpush.bf16.msrb.mxu1 %v3290_v8  ;;  %v3825_v8 = vld [vmem:[#allocation8 + $0x20] sm:$0xf]  ;;  %v4019_v52 = vld [vmem:[#allocation8 + $0x1b0] sm:$0xf0] }
  0xdd   :  { %1651 = vmatpush.bf16.msra.mxu2 %v3562_v5  ;;  %v1382_v60 = vadd.f32 %v1381_v47, %v1369_v58  ;;  %v3842_v5 = vor.u32 %v4653_v62, %v3841_v61  ;;  %v3826_v13 = vor.u32 %v4649_v9, %v3825_v8  ;;  %v4663_v47 = vld [vmem:[#allocation8 + $0xa4] sm:$0xf]  ;;  %v4130_v58 = vor.u32 %v4725_v54, %v4129_v25 }
  0xde   :  { %1638 = vmatpush.bf16.msra.mxu3 %v3434_v4  ;;  %v4687_v9 = vld [vmem:[#allocation8 + $0x164] sm:$0xf] }
  0xdf   :  { %1627 = vmatmul.bf16.vlgmr.msrb.gmra.mxu1 %v5062_v51  ;;  %1665 = vmatpush.bf16.msra.mxu0 %v3674_v7  ;;  %v3890_v51 = vor.u32 %v4665_v39, %v3889_v38  ;;  %v4703_v7 = vld [vmem:[#allocation8 + $0x1e4] sm:$0xf]  ;;  %v3907_v39 = vld [vmem:[#allocation8 + $0xd0] sm:$0xf0] }
  0xe0   :  { %1678 = vmatpush.bf16.msra.mxu1 %v3802_v17  ;;  %v3954_v17 = vor.u32 %v4681_v12, %v3953_v11  ;;  %v4667_v38 = vld [vmem:[#allocation8 + $0xc4] sm:$0xf]  ;;  %v4097_v12 = vld [vmem:[#allocation8 + $0x240] sm:$0xf] }
  0xe1   :  { %1652 = vmatpush.bf16.msra.mxu2 %v3546_v23  ;;  %v4677_v23 = vld [vmem:[#allocation8 + $0x10c] sm:$0xf0]  ;;  %v3910_v16 = vor.u32 %v4667_v38, %v3907_v39  ;;  %v4643_v38 = vld [vmem:[#allocation8 + $0x4] sm:$0xf] }
  0xe2   :  { %1639 = vmatpush.bf16.msra.mxu3 %v3418_v22  ;;  %1666 = vmatmul.bf16.vlgmr.msra.gmra.mxu0 %v5080_v35  ;;  %v4689_v35 = vld [vmem:[#allocation8 + $0x16c] sm:$0xf0]  ;;  %v3937_v22 = vld [vmem:[#allocation8 + $0x100] sm:$0xf] }
  0xe3   :  { %v3986_v63 = vor.u32 %v4689_v35, %v3985_v56  ;;  %v1383_v3 = vpop.f32.mrf.mxu0  ;;  %v3938_v33 = vor.u32 %v4677_v23, %v3937_v22  ;;  %v3875_v56 = vld [vmem:[#allocation8 + $0x90] sm:$0xf0] }
  0xe4   :  { %2483 = vmatpush.bf16.msrb.mxu1 %v4050_v28  ;;  %1653 = vmatmul.bf16.vlgmr.msra.gmra.mxu2 %v5078_v30  ;;  %v4002_v30 = vor.u32 %v4693_v49, %v4001_v48  ;;  %v5123_v31 = vpop.f32.mrf.mxu3  ;;  %v3891_v48 = vld [vmem:[#allocation8 + $0xb0] sm:$0xf0]  ;;  %v4038_v49 = vor.u32 %v4699_v42, %v4035_v43  ;;  %v4709_v42 = vld [vmem:[#allocation8 + $0x20c] sm:$0xf0]  ;;  %v3929_v43 = vld [vmem:[#allocation8 + $0xe8] sm:$0xf] }
  0xe5   :  { %1640 = vmatmul.bf16.vlgmr.msra.gmra.mxu3 %v5066_v57  ;;  %v1394_v57 = vpop.f32.mrf.mxu1  ;;  %v1421_v14 = vadd.f32 %v5123_v31, %v329_v1 }
  0xe6   :  { %2470 = vmatpush.bf16.msrb.mxu3 %v3922_v24  ;;  %v1395_v37 = vadd.f32 %v1394_v57, %v1382_v60  ;;  %v4178_v24 = vor.u32 %v4737_v19, %v4177_v18  ;;  %v4695_v57 = vld [vmem:[#allocation8 + $0x1a4] sm:$0xf]  ;;  %v4003_v60 = vld [vmem:[#allocation8 + $0x190] sm:$0xf0] }
  0xe7   :  { %v5127_v6 = vpop.f32.mrf.mxu2  ;;  %v4022_v35 = vor.u32 %v4695_v57, %v4019_v52  ;;  %v4683_v19 = vld [vmem:[#allocation8 + $0x144] sm:$0xf] }
  0xe8   :  { %2484 = vmatpush.bf16.msrb.mxu1 %v4034_v40  ;;  %v1408_v55 = vadd.f32 %v5115_v34, %v1395_v37  ;;  %2496 = vmatpush.bf16.msrb.mxu2 %v4178_v24  ;;  %v4161_v34 = vld [vmem:[#allocation8 + $0x2c0] sm:$0xf]  ;;  %v4054_v40 = vor.u32 %v4703_v7, %v4051_v26  ;;  %v4713_v7 = vld [vmem:[#allocation8 + $0x22c] sm:$0xf0]  ;;  %v1434_v26 = vadd.f32 %v5127_v6, %v1421_v14  ;;  %v4057_v14 = vld [vmem:[#allocation8 + $0x1e8] sm:$0xf] }
  0xe9   :  { %v4081_v24 = vld [vmem:[#allocation8 + $0x220] sm:$0xf] }
  0xea   :  { %2471 = vmatpush.bf16.msrb.mxu3 %v3906_v36  ;;  %v1684_v29 = vmax.f32 %v1408_v55, 0.0  ;;  %v4733_v36 = vld [vmem:[#allocation8 + $0x2cc] sm:$0xf0]  ;;  %v3843_v55 = vld [vmem:[#allocation8 + $0x50] sm:$0xf0] }
  0xeb   :  { %v4162_v41 = vor.u32 %v4733_v36, %v4161_v34  ;;  %v3846_v23 = vor.u32 %v4651_v15, %v3843_v55  ;;  %v3955_v34 = vld [vmem:[#allocation8 + $0x130] sm:$0xf0]  ;;  %v4706_v15 = vld [vmem:[#allocation8 + $0x1f4] sm:$0xf0] }
  0xec   :  { %2485 = vmatpush.bf16.msrb.mxu1 %v4018_v46  ;;  %v1422_v20 = vpop.f32.mrf.mxu3  ;;  %v4729_v46 = vld [vmem:[#allocation8 + $0x2ac] sm:$0xf0] }
  0xed   :  { %v1396_v4 = vpop.f32.mrf.mxu1  ;;  %2497 = vmatpush.bf16.msrb.mxu2 %v4162_v41  ;;  %v4146_v50 = vor.u32 %v4729_v46, %v4145_v44  ;;  %v3971_v20 = vld [vmem:[#allocation8 + $0x150] sm:$0xf0]  ;;  %v4065_v41 = vld [vmem:[#allocation8 + $0x200] sm:$0xf]  ;;  %v4735_v44 = vld [vmem:[#allocation8 + $0x2e4] sm:$0xf] }
  0xee   :  { %2472 = vmatpush.bf16.msrb.mxu3 %v3890_v51  ;;  %v5130_v51 = vpack.c.bf16 %v1684_v29, %v1684_v29  ;;  %v4655_v4 = vld [vmem:[#allocation8 + $0x64] sm:$0xf]  ;;  %v3974_v31 = vor.u32 %v4683_v19, %v3971_v20  ;;  %v4066_v6 = vor.u32 %v4709_v42, %v4065_v41  ;;  %v4179_v46 = vld [vmem:[#allocation8 + $0x2f0] sm:$0xf0]  ;;  %v4662_v19 = vld [vmem:[#allocation8 + $0x94] sm:$0xf0] }
  0xef   :  { %3806 = vmatmul.msk.bf16.vlgmr.msra.gmra.mxu1 %vm1316_vm0, %v5074_v45  ;;  %v4671_v45 = vld [vmem:[#allocation8 + $0xe4] sm:$0xf]  ;;  %v1435_v28 = vpop.f32.mrf.mxu2  ;;  %v4182_v57 = vor.u32 %v4735_v44, %v4179_v46  ;;  %v4257_v42 = vld [vmem:[#allocation8 + $0x380] sm:$0xf] }
  0xf0   :  { %2486 = vmatpush.bf16.msrb.mxu1 %v4002_v30  ;;  %v3926_v32 = vor.u32 %v4671_v45, %v3923_v21  ;;  %v4659_v30 = vld [vmem:[#allocation8 + $0x84] sm:$0xf]  ;;  %v3827_v28 = vld [vmem:[#allocation8 + $0x30] sm:$0xf0] }
  0xf1   :  { %2498 = vmatpush.bf16.msrb.mxu2 %v4146_v50  ;;  %v3878_v62 = vor.u32 %v4659_v30, %v3875_v56  ;;  %v3939_v50 = vld [vmem:[#allocation8 + $0x110] sm:$0xf0]  ;;  %v3913_v56 = vld [vmem:[#allocation8 + $0xc8] sm:$0xf]  ;;  %v4723_v20 = vld [vmem:[#allocation8 + $0x284] sm:$0xf] }
  0xf2   :  { %2473 = vmatpush.bf16.msrb.mxu3 %v3874_v53  ;;  %v3894_v53 = vor.u32 %v4663_v47, %v3891_v48  ;;  %v4674_v48 = vld [vmem:[#allocation8 + $0xf4] sm:$0xf0] }
  0xf3   :  { %v3930_v30 = vor.u32 %v4674_v48, %v3929_v43  ;;  %v4757_v43 = vld [vmem:[#allocation8 + $0x38c] sm:$0xf0]  ;;  %v3849_v48 = vld [vmem:[#allocation8 + $0x48] sm:$0xf] }
  0xf4   :  { %2487 = vmatpush.bf16.msrb.mxu1 %v3986_v63  ;;  %v4113_v63 = vld [vmem:[#allocation8 + $0x260] sm:$0xf]  ;;  %v4258_v44 = vor.u32 %v4757_v43, %v4257_v42  ;;  %v4767_v42 = vld [vmem:[#allocation8 + $0x3e4] sm:$0xf]  ;;  %v4307_v43 = vld [vmem:[#allocation8 + $0x3f0] sm:$0xf0] }
  0xf5   :  { %2499 = vmatpush.bf16.msrb.mxu2 %v4130_v58  ;;  %v4114_v8 = vor.u32 %v4721_v0, %v4113_v63  ;;  %v4731_v58 = vld [vmem:[#allocation8 + $0x2c4] sm:$0xf]  ;;  %v4769_v63 = vld [vmem:[#allocation8 + $0x3ec] sm:$0xf0] }
  0xf6   :  { %2474 = vmatpush.bf16.msrb.mxu3 %v3858_v59  ;;  %v4691_v59 = vld [vmem:[#allocation8 + $0x184] sm:$0xf] }
  0xf7   :  { %v4006_v37 = vor.u32 %v4691_v59, %v4003_v60  ;;  %v4163_v59 = vld [vmem:[#allocation8 + $0x2d0] sm:$0xf0]  ;;  %v4670_v60 = vld [vmem:[#allocation8 + $0xd4] sm:$0xf0] }
  0xf8   :  { %2488 = vmatpush.bf16.msrb.mxu1 %v3970_v10  ;;  %v3987_v10 = vld [vmem:[#allocation8 + $0x170] sm:$0xf0] }
  0xf9   :  { %2500 = vmatpush.bf16.msrb.mxu2 %v4114_v8  ;;  %v3990_v45 = vor.u32 %v4687_v9, %v3987_v10  ;;  %v4666_v9 = vld [vmem:[#allocation8 + $0xb4] sm:$0xf0] }
  0xfa   :  { %2475 = vmatpush.bf16.msrb.mxu3 %v3842_v5  ;;  %v3859_v5 = vld [vmem:[#allocation8 + $0x70] sm:$0xf0] }
  0xfb   :  { %v1446_v61 = vpop.f32.mrf.mxu0  ;;  %v3862_v11 = vor.u32 %v4655_v4, %v3859_v5  ;;  %v3897_v4 = vld [vmem:[#allocation8 + $0xa8] sm:$0xf]  ;;  %v4727_v5 = vld [vmem:[#allocation8 + $0x2a4] sm:$0xf] }
  0xfc   :  { %2489 = vmatpush.bf16.msrb.mxu1 %v3954_v17  ;;  %v1459_v3 = vpop.f32.mrf.mxu1  ;;  %v1447_v36 = vadd.f32 %v1446_v61, %v1434_v26  ;;  %v4166_v61 = vor.u32 %v4731_v58, %v4163_v59  ;;  %v4041_v26 = vld [vmem:[#allocation8 + $0x1c8] sm:$0xf] }
  0xfd   :  { %v3833_v59 = vld [vmem:[#allocation8 + $0x28] sm:$0xf] }
  0xfe   :  { %2476 = vmatpush.bf16.msrb.mxu3 %v3826_v13  ;;  %v4717_v13 = vld [vmem:[#allocation8 + $0x24c] sm:$0xf0]  ;;  %v1460_v52 = vadd.f32 %v1459_v3, %v1447_v36  ;;  %v3914_v3 = vor.u32 %v4670_v60, %v3913_v56  ;;  %v4694_v56 = vld [vmem:[#allocation8 + $0x194] sm:$0xf0]  ;;  %v4711_v60 = vld [vmem:[#allocation8 + $0x224] sm:$0xf] }
  0xff   :  { %v4098_v17 = vor.u32 %v4717_v13, %v4097_v12  ;;  %v4765_v12 = vld [vmem:[#allocation8 + $0x3cc] sm:$0xf0] }
 0x100   :  { %2490 = vmatpush.bf16.msrb.mxu1 %v3938_v33  ;;  %v4679_v33 = vld [vmem:[#allocation8 + $0x124] sm:$0xf] }
 0x101   :  { %2501 = vmatpush.bf16.msrb.mxu2 %v4098_v17 }
 0x102   :  { %2477 = vmatpush.bf16.msrb.mxu3 %v3810_v27  ;;  %v4647_v27 = vld [vmem:[#allocation8 + $0x24] sm:$0xf] }
 0x103   :  { %v1448_v21 = vpop.f32.mrf.mxu0  ;;  %v3830_v39 = vor.u32 %v4647_v27, %v3827_v28  ;;  %v4702_v27 = vld [vmem:[#allocation8 + $0x1d4] sm:$0xf0] }
 0x104   :  { %2535 = vmatpush.bf16.msra.mxu1 %v4054_v40  ;;  %v1472_v18 = vpop.f32.mrf.mxu3  ;;  %v1461_v29 = vpop.f32.mrf.mxu1  ;;  %v3811_v40 = vld [vmem:[#allocation8 + $0x10] sm:$0xf0]  ;;  %v4058_v21 = vor.u32 %v4706_v15, %v4057_v14  ;;  %v4646_v14 = vld [vmem:[#allocation8 + $0x14] sm:$0xf0]  ;;  %v4707_v15 = vld [vmem:[#allocation8 + $0x204] sm:$0xf] }
 0x105   :  { %2478 = vmatmul.bf16.vlgmr.msrb.gmra.mxu3 %v5130_v51  ;;  %v1473_v54 = vadd.f32 %v1472_v18, %v1460_v52  ;;  %v3898_v18 = vor.u32 %v4666_v9, %v3897_v4  ;;  %v4654_v52 = vld [vmem:[#allocation8 + $0x54] sm:$0xf0]  ;;  %v4225_v4 = vld [vmem:[#allocation8 + $0x340] sm:$0xf] }
 0x106   :  { %2522 = vmatpush.bf16.msra.mxu3 %v3926_v32  ;;  %v4082_v32 = vor.u32 %v4713_v7, %v4081_v24  ;;  %v4761_v24 = vld [vmem:[#allocation8 + $0x3ac] sm:$0xf0]  ;;  %v3850_v58 = vor.u32 %v4654_v52, %v3849_v48  ;;  %v3899_v52 = vld [vmem:[#allocation8 + $0xb8] sm:$0xf0] }
 0x107   :  { %v1485_v22 = vpop.f32.mrf.mxu2 }
 0x108   :  { %2536 = vmatpush.bf16.msra.mxu1 %v4038_v49  ;;  %2502 = vmatpush.bf16.msrb.mxu2 %v4082_v32  ;;  %v4675_v49 = vld [vmem:[#allocation8 + $0x104] sm:$0xf]  ;;  %v1486_v1 = vadd.f32 %v1485_v22, %v1473_v54  ;;  %v4131_v22 = vld [vmem:[#allocation8 + $0x290] sm:$0xf0]  ;;  %v3865_v32 = vld [vmem:[#allocation8 + $0x68] sm:$0xf] }
 0x109   :  { %v4134_v28 = vor.u32 %v4723_v20, %v4131_v22  ;;  %v4753_v54 = vld [vmem:[#allocation8 + $0x36c] sm:$0xf0]  ;;  %v4672_v22 = vld [vmem:[#allocation8 + $0xec] sm:$0xf] }
 0x10a   :  { %2523 = vmatpush.bf16.msra.mxu3 %v3910_v16  ;;  %v3958_v16 = vor.u32 %v4679_v33, %v3955_v34  ;;  %v4719_v33 = vld [vmem:[#allocation8 + $0x264] sm:$0xf]  ;;  %v4115_v34 = vld [vmem:[#allocation8 + $0x270] sm:$0xf0]  ;;  %v4745_v20 = vld [vmem:[#allocation8 + $0x32c] sm:$0xf0] }
 0x10b   :  { %v4118_v41 = vor.u32 %v4719_v33, %v4115_v34 }
 0x10c   :  { %2537 = vmatpush.bf16.msra.mxu1 %v4022_v35  ;;  %v1474_v47 = vpop.f32.mrf.mxu3  ;;  %2503 = vmatpush.bf16.msrb.mxu2 %v4066_v6  ;;  %v3942_v35 = vor.u32 %v4675_v49, %v3939_v50  ;;  %v4698_v6 = vld [vmem:[#allocation8 + $0x1b4] sm:$0xf0]  ;;  %v4715_v49 = vld [vmem:[#allocation8 + $0x244] sm:$0xf]  ;;  %v4099_v50 = vld [vmem:[#allocation8 + $0x250] sm:$0xf0] }
 0x10e   :  { %2524 = vmatpush.bf16.msra.mxu3 %v3894_v53  ;;  %v3814_v53 = vor.u32 %v4643_v38, %v3811_v40  ;;  %v4658_v40 = vld [vmem:[#allocation8 + $0x74] sm:$0xf0] }
 0x10f   :  { %v1487_v25 = vpop.f32.mrf.mxu2  ;;  %v3866_v47 = vor.u32 %v4658_v40, %v3865_v32  ;;  %v4668_v32 = vld [vmem:[#allocation8 + $0xcc] sm:$0xf]  ;;  %v3915_v40 = vld [vmem:[#allocation8 + $0xd8] sm:$0xf0] }
 0x110   :  { %2538 = vmatpush.bf16.msra.mxu1 %v4006_v37  ;;  %2548 = vmatpush.bf16.msra.mxu2 %v4182_v57  ;;  %v4147_v37 = vld [vmem:[#allocation8 + $0x2b0] sm:$0xf0]  ;;  %v4241_v25 = vld [vmem:[#allocation8 + $0x360] sm:$0xf]  ;;  %v3918_v48 = vor.u32 %v4668_v32, %v3915_v40  ;;  %v3835_v40 = vld [vmem:[#allocation8 + $0x38] sm:$0xf0] }
 0x111   :  { %v4150_v10 = vor.u32 %v4727_v5, %v4147_v37  ;;  %v4749_v5 = vld [vmem:[#allocation8 + $0x34c] sm:$0xf0]  ;;  %v3993_v37 = vld [vmem:[#allocation8 + $0x168] sm:$0xf] }
 0x112   :  { %2525 = vmatpush.bf16.msra.mxu3 %v3878_v62  ;;  %v4305_v62 = vld [vmem:[#allocation8 + $0x3e0] sm:$0xf]  ;;  %v4226_v9 = vor.u32 %v4749_v5, %v4225_v4  ;;  %v4700_v5 = vld [vmem:[#allocation8 + $0x1cc] sm:$0xf] }
 0x113   :  { %v4306_v0 = vor.u32 %v4769_v63, %v4305_v62 }
 0x114   :  { %2539 = vmatpush.bf16.msra.mxu1 %v3990_v45  ;;  %2549 = vmatpush.bf16.msra.mxu2 %v4166_v61  ;;  %v1498_v8 = vpop.f32.mrf.mxu3  ;;  %v3881_v45 = vld [vmem:[#allocation8 + $0x88] sm:$0xf]  ;;  %v4083_v61 = vld [vmem:[#allocation8 + $0x230] sm:$0xf0] }
 0x115   :  { %2509 = vmatpush.bf16.msrb.mxu0 %v4306_v0  ;;  %v1499_v13 = vadd.f32 %v1498_v8, %v1486_v1  ;;  %v3882_v29 = vor.u32 %v4662_v19, %v3881_v45  ;;  %v4650_v1 = vld [vmem:[#allocation8 + $0x34] sm:$0xf0]  ;;  %v4209_v19 = vld [vmem:[#allocation8 + $0x320] sm:$0xf] }
 0x116   :  { %2526 = vmatpush.bf16.msra.mxu3 %v3862_v11  ;;  %v4289_v11 = vld [vmem:[#allocation8 + $0x3c0] sm:$0xf]  ;;  %v4690_v8 = vld [vmem:[#allocation8 + $0x174] sm:$0xf0] }
 0x117   :  { %v4290_v55 = vor.u32 %v4765_v12, %v4289_v11  ;;  %v1685_v17 = vmax.f32 %v1499_v13, 0.0  ;;  %v3817_v11 = vld [vmem:[#allocation8 + $0x8] sm:$0xf]  ;;  %v3834_v13 = vor.u32 %v4650_v1, %v3833_v59  ;;  %v3994_v45 = vor.u32 %v4690_v8, %v3993_v37  ;;  %v4759_v1 = vld [vmem:[#allocation8 + $0x3a4] sm:$0xf] }
 0x118   :  { %2540 = vmatpush.bf16.msra.mxu1 %v3974_v31  ;;  %2550 = vmatpush.bf16.msra.mxu2 %v4150_v10 }
 0x119   :  { %2510 = vmatpush.bf16.msrb.mxu0 %v4290_v55  ;;  %v5137_v7 = vpack.c.bf16 %v1685_v17, %v1685_v17  ;;  %v4067_v55 = vld [vmem:[#allocation8 + $0x210] sm:$0xf0]  ;;  %v3977_v17 = vld [vmem:[#allocation8 + $0x148] sm:$0xf] }
 0x11a   :  { %2527 = vmatpush.bf16.msra.mxu3 %v3846_v23  ;;  %v4273_v23 = vld [vmem:[#allocation8 + $0x3a0] sm:$0xf] }
 0x11b   :  { %v4274_v31 = vor.u32 %v4761_v24, %v4273_v23  ;;  %2491 = vmatmul.bf16.vlgmr.msrb.gmra.mxu1 %v5137_v7  ;;  %v5140_v38 = vpop.f32.mrf.mxu0  ;;  %v3931_v23 = vld [vmem:[#allocation8 + $0xf8] sm:$0xf0]  ;;  %v4210_v24 = vor.u32 %v4745_v20, %v4209_v19  ;;  %v4652_v19 = vld [vmem:[#allocation8 + $0x4c] sm:$0xf] }
 0x11c   :  { %2541 = vmatpush.bf16.msra.mxu1 %v3958_v16  ;;  %v1500_v36 = vpop.f32.mrf.mxu3  ;;  %2551 = vmatpush.bf16.msra.mxu2 %v4134_v28  ;;  %v4025_v16 = vld [vmem:[#allocation8 + $0x1a8] sm:$0xf]  ;;  %v5142_v46 = vpop.f32.mrf.mxu1  ;;  %v4682_v28 = vld [vmem:[#allocation8 + $0x134] sm:$0xf0] }
 0x11d   :  { %2511 = vmatpush.bf16.msrb.mxu0 %v4274_v31  ;;  %v4026_v57 = vor.u32 %v4698_v6, %v4025_v16  ;;  %v4193_v36 = vld [vmem:[#allocation8 + $0x300] sm:$0xf]  ;;  %v330_v16 = vperm.slane %v5110_v2, 2 }
 0x11e   :  { %2528 = vmatpush.bf16.msra.mxu3 %v3830_v39  ;;  %v4042_v39 = vor.u32 %v4702_v27, %v4041_v26  ;;  %v3818_v26 = vor.u32 %v4646_v14, %v3817_v11  ;;  %v3961_v27 = vld [vmem:[#allocation8 + $0x128] sm:$0xf]  ;;  %v4656_v11 = vld [vmem:[#allocation8 + $0x6c] sm:$0xf]  ;;  %v4755_v14 = vld [vmem:[#allocation8 + $0x384] sm:$0xf] }
 0x120   :  { %2542 = vmatpush.bf16.msra.mxu1 %v3942_v35  ;;  %2552 = vmatpush.bf16.msra.mxu2 %v4118_v41  ;;  %v4242_v35 = vor.u32 %v4753_v54, %v4241_v25  ;;  %v4291_v25 = vld [vmem:[#allocation8 + $0x3d0] sm:$0xf0]  ;;  %v1512_v54 = vadd.f32 %v5142_v46, %v330_v16  ;;  %v4043_v46 = vld [vmem:[#allocation8 + $0x1d8] sm:$0xf0]  ;;  %v4688_v16 = vld [vmem:[#allocation8 + $0x16c] sm:$0xf] }
 0x121   :  { %2512 = vmatpush.bf16.msrb.mxu0 %v4258_v44  ;;  %v4310_v44 = vor.u32 %v4767_v42, %v4307_v43  ;;  %v4227_v42 = vld [vmem:[#allocation8 + $0x350] sm:$0xf0] }
 0x122   :  { %2529 = vmatpush.bf16.msra.mxu3 %v3814_v53  ;;  %v4102_v53 = vor.u32 %v4715_v49, %v4099_v50  ;;  %v3945_v49 = vld [vmem:[#allocation8 + $0x108] sm:$0xf]  ;;  %v4678_v50 = vld [vmem:[#allocation8 + $0x114] sm:$0xf0] }
 0x123   :  { %v1539_v63 = vpop.f32.mrf.mxu0 }
 0x124   :  { %2587 = vmatpush.bf16.msrb.mxu1 %v4058_v21  ;;  %2553 = vmatpush.bf16.msra.mxu2 %v4102_v53  ;;  %v1513_v12 = vpop.f32.mrf.mxu1  ;;  %v4686_v21 = vld [vmem:[#allocation8 + $0x154] sm:$0xf0]  ;;  %v4763_v53 = vld [vmem:[#allocation8 + $0x3c4] sm:$0xf] }
 0x125   :  { %2530 = vmatmul.bf16.vlgmr.msra.gmra.mxu3 %v5130_v51  ;;  %2513 = vmatpush.bf16.msrb.mxu0 %v4242_v35  ;;  %v3978_v31 = vor.u32 %v4686_v21, %v3977_v17  ;;  %v4294_v35 = vor.u32 %v4763_v53, %v4291_v25  ;;  %v4046_v12 = vor.u32 %v4700_v5, %v4043_v46  ;;  %v4027_v17 = vld [vmem:[#allocation8 + $0x1b8] sm:$0xf0]  ;;  %v4743_v25 = vld [vmem:[#allocation8 + $0x324] sm:$0xf]  ;;  %v4195_v5 = vld [vmem:[#allocation8 + $0x310] sm:$0xf0] }
 0x126   :  { %2574 = vmatpush.bf16.msrb.mxu3 %v3930_v30  ;;  %v4009_v30 = vld [vmem:[#allocation8 + $0x188] sm:$0xf]  ;;  %v3851_v21 = vld [vmem:[#allocation8 + $0x58] sm:$0xf0]  ;;  %v4680_v46 = vld [vmem:[#allocation8 + $0x12c] sm:$0xf] }
 0x127   :  { %v4010_v0 = vor.u32 %v4694_v56, %v4009_v30  ;;  %v5146_v10 = vpop.f32.mrf.mxu2  ;;  %v4704_v30 = vld [vmem:[#allocation8 + $0x1ec] sm:$0xf]  ;;  %v4059_v56 = vld [vmem:[#allocation8 + $0x1f8] sm:$0xf0] }
 0x128   :  { %2588 = vmatpush.bf16.msrb.mxu1 %v4042_v39  ;;  %v5144_v62 = vpop.f32.mrf.mxu3  ;;  %v4741_v39 = vld [vmem:[#allocation8 + $0x30c] sm:$0xf0]  ;;  %v4062_v63 = vor.u32 %v4704_v30, %v4059_v56  ;;  %v3819_v53 = vld [vmem:[#allocation8 + $0x18] sm:$0xf0]  ;;  %v4684_v56 = vld [vmem:[#allocation8 + $0x14c] sm:$0xf] }
 0x129   :  { %2514 = vmatpush.bf16.msrb.mxu0 %v4226_v9  ;;  %v4194_v41 = vor.u32 %v4741_v39, %v4193_v36  ;;  %v1525_v4 = vadd.f32 %v5144_v62, %v1512_v54  ;;  %v4211_v54 = vld [vmem:[#allocation8 + $0x330] sm:$0xf0] }
 0x12a   :  { %2575 = vmatpush.bf16.msrb.mxu3 %v3914_v3  ;;  %v4086_v3 = vor.u32 %v4711_v60, %v4083_v61  ;;  %v4660_v60 = vld [vmem:[#allocation8 + $0x8c] sm:$0xf] }
 0x12b   :  { %2543 = vmatmul.bf16.vlgmr.msra.gmra.mxu1 %v5137_v7  ;;  %v5149_v34 = vpop.f32.mrf.mxu0 }
 0x12c   :  { %2589 = vmatpush.bf16.msrb.mxu1 %v4026_v57  ;;  %2554 = vmatpush.bf16.msra.mxu2 %v4086_v3  ;;  %v4664_v57 = vld [vmem:[#allocation8 + $0xac] sm:$0xf]  ;;  %v4275_v3 = vld [vmem:[#allocation8 + $0x3b0] sm:$0xf0] }
 0x12d   :  { %2515 = vmatpush.bf16.msrb.mxu0 %v4210_v24  ;;  %v3902_v59 = vor.u32 %v4664_v57, %v3899_v52  ;;  %v4278_v37 = vor.u32 %v4759_v1, %v4275_v3  ;;  %v4644_v57 = vld [vmem:[#allocation8 + $0xc] sm:$0xf] }
 0x12e   :  { %2576 = vmatpush.bf16.msrb.mxu3 %v3898_v18  ;;  %v4070_v18 = vor.u32 %v4707_v15, %v4067_v55  ;;  %v4259_v15 = vld [vmem:[#allocation8 + $0x390] sm:$0xf0]  ;;  %v1538_v55 = vadd.f32 %v5140_v38, %v1525_v4  ;;  %v4739_v4 = vld [vmem:[#allocation8 + $0x304] sm:$0xf] }
 0x12f   :  { %v1552_v6 = vpop.f32.mrf.mxu2  ;;  %v4262_v62 = vor.u32 %v4755_v14, %v4259_v15  ;;  %v4676_v15 = vld [vmem:[#allocation8 + $0x10c] sm:$0xf] }
 0x130   :  { %2590 = vmatpush.bf16.msrb.mxu1 %v4010_v0  ;;  %v1526_v33 = vpop.f32.mrf.mxu3  ;;  %2555 = vmatpush.bf16.msra.mxu2 %v4070_v18  ;;  %v3883_v0 = vld [vmem:[#allocation8 + $0x98] sm:$0xf0]  ;;  %v1551_v24 = vadd.f32 %v5146_v10, %v1538_v55 }
 0x131   :  { %2516 = vmatpush.bf16.msrb.mxu0 %v4194_v41  ;;  %v3886_v9 = vor.u32 %v4660_v60, %v3883_v0  ;;  %v4648_v33 = vld [vmem:[#allocation8 + $0x2c] sm:$0xf]  ;;  %v4747_v41 = vld [vmem:[#allocation8 + $0x344] sm:$0xf]  ;;  %v3995_v10 = vld [vmem:[#allocation8 + $0x178] sm:$0xf0] }
 0x132   :  { %2577 = vmatpush.bf16.msrb.mxu3 %v3882_v29  ;;  %v3934_v29 = vor.u32 %v4672_v22, %v3931_v23  ;;  %v4751_v22 = vld [vmem:[#allocation8 + $0x364] sm:$0xf]  ;;  %v4243_v23 = vld [vmem:[#allocation8 + $0x370] sm:$0xf0]  ;;  %v3998_v52 = vor.u32 %v4688_v16, %v3995_v10  ;;  %v4734_v0 = vld [vmem:[#allocation8 + $0x2d4] sm:$0xf0] }
 0x133   :  { %v1591_v61 = vpop.f32.mrf.mxu0  ;;  %v4246_v38 = vor.u32 %v4751_v22, %v4243_v23  ;;  %v3947_v55 = vld [vmem:[#allocation8 + $0x118] sm:$0xf0]  ;;  %v4722_v22 = vld [vmem:[#allocation8 + $0x274] sm:$0xf0]  ;;  %v4736_v10 = vld [vmem:[#allocation8 + $0x2ec] sm:$0xf] }
 0x134   :  { %2591 = vmatpush.bf16.msrb.mxu1 %v3994_v45  ;;  %v4696_v45 = vld [vmem:[#allocation8 + $0x1ac] sm:$0xf] }
 0x135   :  { %2561 = vmatpush.bf16.msra.mxu0 %v4310_v44  ;;  %v4030_v20 = vor.u32 %v4696_v45, %v4027_v17  ;;  %v4230_v44 = vor.u32 %v4747_v41, %v4227_v42  ;;  %v4137_v17 = vld [vmem:[#allocation8 + $0x288] sm:$0xf] }
 0x136   :  { %2578 = vmatpush.bf16.msrb.mxu3 %v3866_v47  ;;  %v3962_v47 = vor.u32 %v4682_v28, %v3961_v27  ;;  %v4011_v27 = vld [vmem:[#allocation8 + $0x198] sm:$0xf0] }
 0x138   :  { %2592 = vmatpush.bf16.msrb.mxu1 %v3978_v31 }
 0x139   :  { %2562 = vmatpush.bf16.msra.mxu0 %v4294_v35  ;;  %v3979_v35 = vld [vmem:[#allocation8 + $0x158] sm:$0xf0] }
 0x13a   :  { %2579 = vmatpush.bf16.msrb.mxu3 %v3850_v58  ;;  %v3946_v58 = vor.u32 %v4678_v50, %v3945_v49  ;;  %v4185_v49 = vld [vmem:[#allocation8 + $0x2e8] sm:$0xf]  ;;  %v4738_v50 = vld [vmem:[#allocation8 + $0x2f4] sm:$0xf0]  ;;  %v3982_v1 = vor.u32 %v4684_v56, %v3979_v35 }
 0x13b   :  { %v4186_v60 = vor.u32 %v4738_v50, %v4185_v49  ;;  %v4732_v50 = vld [vmem:[#allocation8 + $0x2cc] sm:$0xf] }
 0x13c   :  { %2593 = vmatpush.bf16.msrb.mxu1 %v3962_v47  ;;  %v1563_v8 = vpop.f32.mrf.mxu1 }
 0x13d   :  { %2563 = vmatpush.bf16.msra.mxu0 %v4278_v37  ;;  %v1564_v31 = vadd.f32 %v1563_v8, %v1551_v24  ;;  %v3963_v37 = vld [vmem:[#allocation8 + $0x138] sm:$0xf0] }
 0x13e   :  { %2580 = vmatpush.bf16.msrb.mxu3 %v3834_v13  ;;  %v3867_v13 = vld [vmem:[#allocation8 + $0x78] sm:$0xf0]  ;;  %v3966_v14 = vor.u32 %v4680_v46, %v3963_v37  ;;  %v4281_v37 = vld [vmem:[#allocation8 + $0x3a8] sm:$0xf] }
 0x13f   :  { %v3870_v18 = vor.u32 %v4656_v11, %v3867_v13  ;;  %v5158_v28 = vpop.f32.mrf.mxu0  ;;  %v4730_v13 = vld [vmem:[#allocation8 + $0x2b4] sm:$0xf0]  ;;  %v4139_v46 = vld [vmem:[#allocation8 + $0x298] sm:$0xf0] }
 0x140   :  { %2594 = vmatpush.bf16.msrb.mxu1 %v3946_v58 }
 0x141   :  { %2564 = vmatpush.bf16.msra.mxu0 %v4262_v62  ;;  %v4726_v62 = vld [vmem:[#allocation8 + $0x294] sm:$0xf0] }
 0x142   :  { %2581 = vmatpush.bf16.msrb.mxu3 %v3818_v26  ;;  %v4692_v26 = vld [vmem:[#allocation8 + $0x18c] sm:$0xf] }
 0x143   :  { %2595 = vmatmul.bf16.vlgmr.msrb.gmra.mxu1 %v5137_v7  ;;  %v4014_v39 = vor.u32 %v4692_v26, %v4011_v27  ;;  %v4105_v27 = vld [vmem:[#allocation8 + $0x248] sm:$0xf] }
 0x144   :  { %2639 = vmatpush.bf16.msra.mxu1 %v4062_v63  ;;  %v1565_v32 = vpop.f32.mrf.mxu1  ;;  %v4169_v63 = vld [vmem:[#allocation8 + $0x2c8] sm:$0xf] }
 0x145   :  { %2582 = vmatmul.bf16.vlgmr.msrb.gmra.mxu3 %v5130_v51  ;;  %2565 = vmatpush.bf16.msra.mxu0 %v4246_v38  ;;  %v4170_v11 = vor.u32 %v4734_v0, %v4169_v63  ;;  %v4714_v32 = vld [vmem:[#allocation8 + $0x234] sm:$0xf0]  ;;  %v4297_v63 = vld [vmem:[#allocation8 + $0x3c8] sm:$0xf] }
 0x146   :  { %2626 = vmatpush.bf16.msra.mxu3 %v3934_v29  ;;  %v3854_v29 = vor.u32 %v4652_v19, %v3851_v21  ;;  %v3950_v19 = vor.u32 %v4676_v15, %v3947_v55  ;;  %v4121_v21 = vld [vmem:[#allocation8 + $0x268] sm:$0xf]  ;;  %v4766_v0 = vld [vmem:[#allocation8 + $0x3d4] sm:$0xf0] }
 0x147   :  { %v1602_v6 = vpop.f32.mrf.mxu2  ;;  %v1617_v58 = vpop.f32.mrf.mxu0  ;;  %v4122_v26 = vor.u32 %v4722_v22, %v4121_v21  ;;  %v4758_v15 = vld [vmem:[#allocation8 + $0x394] sm:$0xf0]  ;;  %v4712_v22 = vld [vmem:[#allocation8 + $0x22c] sm:$0xf] }
 0x148   :  { %2640 = vmatpush.bf16.msra.mxu1 %v4046_v12  ;;  %v1576_v36 = vpop.f32.mrf.mxu3  ;;  %v4153_v12 = vld [vmem:[#allocation8 + $0x2a8] sm:$0xf] }
 0x149   :  { %v1577_v43 = vadd.f32 %v1576_v36, %v1564_v31  ;;  %2566 = vmatpush.bf16.msra.mxu0 %v4230_v44  ;;  %v4154_v45 = vor.u32 %v4730_v13, %v4153_v12  ;;  %v4720_v12 = vld [vmem:[#allocation8 + $0x26c] sm:$0xf]  ;;  %v4123_v13 = vld [vmem:[#allocation8 + $0x278] sm:$0xf0] }
 0x14a   :  { %2627 = vmatpush.bf16.msra.mxu3 %v3918_v48  ;;  %v3838_v48 = vor.u32 %v4648_v33, %v3835_v40  ;;  %v4126_v55 = vor.u32 %v4720_v12, %v4123_v13 }
 0x14b   :  { %v1590_v47 = vadd.f32 %v5149_v34, %v1577_v43  ;;  %v3822_v34 = vor.u32 %v4644_v57, %v3819_v53  ;;  %v4073_v43 = vld [vmem:[#allocation8 + $0x208] sm:$0xf]  ;;  %v4171_v57 = vld [vmem:[#allocation8 + $0x2d8] sm:$0xf0] }
 0x14c   :  { %2641 = vmatpush.bf16.msra.mxu1 %v4030_v20  ;;  %v4138_v20 = vor.u32 %v4726_v62, %v4137_v17  ;;  %v4174_v35 = vor.u32 %v4732_v50, %v4171_v57  ;;  %v4716_v17 = vld [vmem:[#allocation8 + $0x24c] sm:$0xf]  ;;  %v4107_v62 = vld [vmem:[#allocation8 + $0x258] sm:$0xf0]  ;;  %v5176_v57 = vld [vmem:[#allocation10] sm:$0xf] }
 0x14d   :  { %v1686_v30 = vmax.f32 %v1590_v47, 0.0  ;;  %v4267_v50 = vld [vmem:[#allocation8 + $0x398] sm:$0xf0] }
 0x14e   :  { %2628 = vmatpush.bf16.msra.mxu3 %v3902_v59  ;;  %v4214_v59 = vor.u32 %v4743_v25, %v4211_v54  ;;  %v4313_v25 = vld [vmem:[#allocation8 + $0x3e8] sm:$0xf]  ;;  %v4770_v54 = vld [vmem:[#allocation8 + $0x3f4] sm:$0xf0] }
 0x14f   :  { %v5161_v61 = vpack.c.bf16 %v1686_v30, %v1686_v30  ;;  %v1604_v8 = vpop.f32.mrf.mxu2  ;;  %v4314_v58 = vor.u32 %v4770_v54, %v4313_v25  ;;  %v4251_v25 = vld [vmem:[#allocation8 + $0x378] sm:$0xf0] }
 0x150   :  { %2642 = vmatpush.bf16.msra.mxu1 %v4014_v39  ;;  %v1578_v3 = vpop.f32.mrf.mxu3  ;;  %2567 = vmatpush.bf16.msra.mxu0 %v4214_v59  ;;  %v4728_v59 = vld [vmem:[#allocation8 + $0x2ac] sm:$0xf]  ;;  %v4762_v8 = vld [vmem:[#allocation8 + $0x3b4] sm:$0xf0] }
 0x151   :  { %2504 = vmatmul.bf16.vlgmr.msrb.gmra.mxu2 %v5161_v61 }
 0x152   :  { %2629 = vmatpush.bf16.msra.mxu3 %v3886_v9  ;;  %v4198_v9 = vor.u32 %v4739_v4, %v4195_v5  ;;  %2600 = vmatpush.bf16.msrb.mxu2 %v4186_v60  ;;  %v4155_v60 = vld [vmem:[#allocation8 + $0x2b8] sm:$0xf0]  ;;  %v4298_v4 = vor.u32 %v4766_v0, %v4297_v63  ;;  %v4724_v5 = vld [vmem:[#allocation8 + $0x28c] sm:$0xf] }
 0x153   :  { %v4744_v0 = vld [vmem:[#allocation8 + $0x32c] sm:$0xf] }
 0x154   :  { %2643 = vmatpush.bf16.msra.mxu1 %v3998_v52  ;;  %2568 = vmatpush.bf16.msra.mxu0 %v4198_v9  ;;  %v4142_v9 = vor.u32 %v4724_v5, %v4139_v46  ;;  %v4203_v5 = vld [vmem:[#allocation8 + $0x318] sm:$0xf0] }
 0x156   :  { %2630 = vmatpush.bf16.msra.mxu3 %v3870_v18  ;;  %2601 = vmatpush.bf16.msrb.mxu2 %v4170_v11  ;;  %v331_v18 = vperm.slane %v5110_v2, 3  ;;  %v4282_v11 = vor.u32 %v4762_v8, %v4281_v37 }
 0x158   :  { %2644 = vmatpush.bf16.msra.mxu1 %v3982_v1  ;;  %v1603_v23 = vadd.f32 %v1602_v6, %v331_v18  ;;  %v4187_v6 = vld [vmem:[#allocation8 + $0x2f8] sm:$0xf0]  ;;  %v4158_v1 = vor.u32 %v4728_v59, %v4155_v60  ;;  %v4249_v18 = vld [vmem:[#allocation8 + $0x368] sm:$0xf] }
 0x15a   :  { %2631 = vmatpush.bf16.msra.mxu3 %v3854_v29  ;;  %2602 = vmatpush.bf16.msrb.mxu2 %v4154_v45  ;;  %v1616_v38 = vadd.f32 %v5158_v28, %v1603_v23  ;;  %v4089_v29 = vld [vmem:[#allocation8 + $0x228] sm:$0xf]  ;;  %v4091_v23 = vld [vmem:[#allocation8 + $0x238] sm:$0xf0] }
 0x15b   :  { %v4090_v42 = vor.u32 %v4714_v32, %v4089_v29  ;;  %v4217_v29 = vld [vmem:[#allocation8 + $0x328] sm:$0xf]  ;;  %v4746_v32 = vld [vmem:[#allocation8 + $0x334] sm:$0xf0] }
 0x15c   :  { %2645 = vmatpush.bf16.msra.mxu1 %v3966_v14  ;;  %v1628_v24 = vpop.f32.mrf.mxu1  ;;  %v4265_v14 = vld [vmem:[#allocation8 + $0x388] sm:$0xf] }
 0x15d   :  { %v1629_v33 = vadd.f32 %v1628_v24, %v1616_v38  ;;  %v4266_v45 = vor.u32 %v4758_v15, %v4265_v14  ;;  %v4233_v24 = vld [vmem:[#allocation8 + $0x348] sm:$0xf]  ;;  %v4778_v14 = vld [vmem:[#allocation11 + $0x38] sm:$0xff] }
 0x15e   :  { %2632 = vmatpush.bf16.msra.mxu3 %v3838_v48  ;;  %2603 = vmatpush.bf16.msrb.mxu2 %v4138_v20  ;;  %v4190_v48 = vor.u32 %v4736_v10, %v4187_v6  ;;  %v4110_v20 = vor.u32 %v4716_v17, %v4107_v62  ;;  %v4764_v10 = vld [vmem:[#allocation8 + $0x3cc] sm:$0xf]  ;;  %v4299_v6 = vld [vmem:[#allocation8 + $0x3d8] sm:$0xf0] }
 0x15f   :  { %v1667_v2 = vpop.f32.mrf.mxu0 }
 0x160   :  { %2646 = vmatpush.bf16.msra.mxu1 %v3950_v19  ;;  %v4754_v19 = vld [vmem:[#allocation8 + $0x374] sm:$0xf0] }
 0x161   :  { %2556 = vmatmul.bf16.vlgmr.msra.gmra.mxu2 %v5161_v61  ;;  %v4250_v21 = vor.u32 %v4754_v19, %v4249_v18  ;;  %v4776_v18 = vld [vmem:[#allocation11 + $0x28] sm:$0xff] }
 0x162   :  { %2633 = vmatpush.bf16.msra.mxu3 %v3822_v34  ;;  %2604 = vmatpush.bf16.msrb.mxu2 %v4122_v26  ;;  %v4750_v26 = vld [vmem:[#allocation8 + $0x354] sm:$0xf0] }
 0x163   :  { %2647 = vmatmul.bf16.vlgmr.msra.gmra.mxu1 %v5137_v7  ;;  %v4710_v7 = vld [vmem:[#allocation8 + $0x214] sm:$0xf0]  ;;  %v4234_v38 = vor.u32 %v4750_v26, %v4233_v24  ;;  %v4786_v24 = vld [vmem:[#allocation11 + $0x78] sm:$0xff] }
 0x164   :  { %v1630_v36 = vpop.f32.mrf.mxu1  ;;  %v4074_v47 = vor.u32 %v4710_v7, %v4073_v43  ;;  %v4315_v43 = vld [vmem:[#allocation8 + $0x3f8] sm:$0xf0]  ;;  %2959 = vmatpush.bf16.msrb.mxu1 %v4786_v24  ;;  %v4773_v26 = vld [vmem:[#allocation11 + $0x10] sm:$0xff] }
 0x165   :  { %2634 = vmatmul.bf16.vlgmr.msra.gmra.mxu3 %v5130_v51  ;;  %v4718_v51 = vld [vmem:[#allocation8 + $0x254] sm:$0xf0]  ;;  %v4218_v36 = vor.u32 %v4746_v32, %v4217_v29  ;;  %v1825_v32 = vperm.slane %v5176_v57, 3 }
 0x166   :  { %v4106_v31 = vor.u32 %v4718_v51, %v4105_v27  ;;  %v4094_v51 = vor.u32 %v4712_v22, %v4091_v23  ;;  %2946 = vmatpush.bf16.msrb.mxu3 %v4778_v14  ;;  %v4774_v23 = vld [vmem:[#allocation11 + $0x18] sm:$0xff]  ;;  %v4796_v14 = vld [vmem:[#allocation11 + $0xc8] sm:$0xff] }
 0x167   :  { %v1654_v41 = vpop.f32.mrf.mxu2  ;;  %v1669_v28 = vpop.f32.mrf.mxu0 }
 0x168   :  { %v1641_v39 = vpop.f32.mrf.mxu3  ;;  %2605 = vmatpush.bf16.msrb.mxu2 %v4106_v31  ;;  %v4075_v31 = vld [vmem:[#allocation8 + $0x218] sm:$0xf0]  ;;  %v4302_v28 = vor.u32 %v4764_v10, %v4299_v6  ;;  %v4780_v10 = vld [vmem:[#allocation11 + $0x48] sm:$0xff] }
 0x169   :  { %v1642_v40 = vadd.f32 %v1641_v39, %v1629_v33  ;;  %v4201_v39 = vld [vmem:[#allocation8 + $0x308] sm:$0xf]  ;;  %v4792_v6 = vld [vmem:[#allocation11 + $0xa8] sm:$0xff] }
 0x16b   :  { %v1655_v16 = vadd.f32 %v1654_v41, %v1642_v40  ;;  %v4742_v40 = vld [vmem:[#allocation8 + $0x314] sm:$0xf0] }
 0x16c   :  { %2606 = vmatpush.bf16.msrb.mxu2 %v4090_v42  ;;  %v1680_v49 = vpop.f32.mrf.mxu1  ;;  %v4768_v42 = vld [vmem:[#allocation8 + $0x3ec] sm:$0xf]  ;;  %v4202_v7 = vor.u32 %v4742_v40, %v4201_v39 }
 0x16d   :  { %v1668_v44 = vadd.f32 %v1667_v2, %v1655_v16  ;;  %v4708_v2 = vld [vmem:[#allocation8 + $0x20c] sm:$0xf]  ;;  %v4318_v16 = vor.u32 %v4768_v42, %v4315_v43  ;;  %v4793_v42 = vld [vmem:[#allocation11 + $0xb0] sm:$0xff] }
 0x16e   :  { %v4078_v33 = vor.u32 %v4708_v2, %v4075_v31  ;;  %v4771_v2 = vld [vmem:[#allocation11] sm:$0xff] }
 0x16f   :  { %v1681_v52 = vadd.f32 %v1680_v49, %v1668_v44  ;;  %v1656_v30 = vpop.f32.mrf.mxu2  ;;  %v4760_v44 = vld [vmem:[#allocation8 + $0x3ac] sm:$0xf]  ;;  %v4783_v31 = vld [vmem:[#allocation11 + $0x60] sm:$0xff] }
 0x170   :  { %v1643_v53 = vpop.f32.mrf.mxu3  ;;  %2607 = vmatpush.bf16.msrb.mxu2 %v4074_v47  ;;  %v4283_v47 = vld [vmem:[#allocation8 + $0x3b8] sm:$0xf0]  ;;  %v4756_v49 = vld [vmem:[#allocation8 + $0x38c] sm:$0xf] }
 0x171   :  { %v1687_v56 = vmax.f32 %v1681_v52, 0.0  ;;  %v4270_v52 = vor.u32 %v4756_v49, %v4267_v50  ;;  %v1822_v53 = vperm.slane %v5176_v57, 0  ;;  %v4790_v50 = vld [vmem:[#allocation11 + $0x98] sm:$0xff] }
 0x173   :  { %v5169_v34 = vpack.c.bf16 %v1687_v56, %v1687_v56  ;;  %2608 = vmatmul.bf16.vlgmr.msrb.gmra.mxu2 %v5161_v61  ;;  %v4748_v56 = vld [vmem:[#allocation8 + $0x34c] sm:$0xf] }
 0x174   :  { %2652 = vmatpush.bf16.msra.mxu2 %v4190_v48  ;;  %v1682_v3 = vpop.f32.mrf.mxu1  ;;  %v4286_v48 = vor.u32 %v4760_v44, %v4283_v47  ;;  %v4779_v44 = vld [vmem:[#allocation11 + $0x40] sm:$0xff] }
 0x175   :  { %2517 = vmatmul.bf16.vlgmr.msrb.gmra.mxu0 %v5169_v34  ;;  %v4791_v47 = vld [vmem:[#allocation11 + $0xa0] sm:$0xff] }
 0x176   :  { %2613 = vmatpush.bf16.msrb.mxu0 %v4314_v58 }
 0x178   :  { %2653 = vmatpush.bf16.msra.mxu2 %v4174_v35  ;;  %v4235_v35 = vld [vmem:[#allocation8 + $0x358] sm:$0xf0] }
 0x179   :  { %v4238_v63 = vor.u32 %v4748_v56, %v4235_v35  ;;  %v4787_v56 = vld [vmem:[#allocation11 + $0x80] sm:$0xff]  ;;  %v4802_v35 = vld [vmem:[#allocation11 + $0xf8] sm:$0xff] }
 0x17a   :  { %2614 = vmatpush.bf16.msrb.mxu0 %v4298_v4  ;;  %v4740_v4 = vld [vmem:[#allocation8 + $0x30c] sm:$0xf] }
 0x17b   :  { %v4206_v8 = vor.u32 %v4740_v4, %v4203_v5  ;;  %v4799_v4 = vld [vmem:[#allocation11 + $0xe0] sm:$0xff] }
 0x17c   :  { %2654 = vmatpush.bf16.msra.mxu2 %v4158_v1  ;;  %v4219_v1 = vld [vmem:[#allocation8 + $0x338] sm:$0xf0] }
 0x17d   :  { %v4222_v3 = vor.u32 %v4744_v0, %v4219_v1  ;;  %v4800_v1 = vld [vmem:[#allocation11 + $0xe8] sm:$0xff] }
 0x17e   :  { %2615 = vmatpush.bf16.msrb.mxu0 %v4282_v11 }
 0x180   :  { %2655 = vmatpush.bf16.msra.mxu2 %v4142_v9  ;;  %v1823_v9 = vperm.slane %v5176_v57, 1 }
 0x182   :  { %2616 = vmatpush.bf16.msrb.mxu0 %v4266_v45  ;;  %v4777_v45 = vld [vmem:[#allocation11 + $0x30] sm:$0xff] }
 0x183   :  { %2947 = vmatpush.bf16.msrb.mxu3 %v4777_v45 }
 0x184   :  { %2656 = vmatpush.bf16.msra.mxu2 %v4126_v55  ;;  %v1824_v55 = vperm.slane %v5176_v57, 2  ;;  %v4789_v57 = vld [vmem:[#allocation11 + $0x90] sm:$0xff] }
 0x185   :  { %2569 = vmatmul.bf16.vlgmr.msra.gmra.mxu0 %v5169_v34 }
 0x186   :  { %2617 = vmatpush.bf16.msrb.mxu0 %v4250_v21  ;;  %v4775_v21 = vld [vmem:[#allocation11 + $0x20] sm:$0xff] }
 0x187   :  { %2948 = vmatpush.bf16.msrb.mxu3 %v4776_v18 }
 0x188   :  { %v2479_v27 = vpop.f32.mrf.mxu3  ;;  %2657 = vmatpush.bf16.msra.mxu2 %v4110_v20 }
 0x189   :  { %v2480_v30 = vadd.f32 %v2479_v27, %v1822_v53  ;;  %v4785_v27 = vld [vmem:[#allocation11 + $0x70] sm:$0xff] }
 0x18a   :  { %2618 = vmatpush.bf16.msrb.mxu0 %v4234_v38  ;;  %2960 = vmatpush.bf16.msrb.mxu1 %v4785_v27  ;;  %v4784_v38 = vld [vmem:[#allocation11 + $0x68] sm:$0xff] }
 0x18b   :  { %2949 = vmatpush.bf16.msrb.mxu3 %v4775_v21 }
 0x18c   :  { %2658 = vmatpush.bf16.msra.mxu2 %v4094_v51  ;;  %v4772_v51 = vld [vmem:[#allocation11 + $0x8] sm:$0xff] }
 0x18e   :  { %2619 = vmatpush.bf16.msrb.mxu0 %v4218_v36  ;;  %2961 = vmatpush.bf16.msrb.mxu1 %v4784_v38  ;;  %v4794_v36 = vld [vmem:[#allocation11 + $0xb8] sm:$0xff] }
 0x18f   :  { %2950 = vmatpush.bf16.msrb.mxu3 %v4774_v23 }
 0x190   :  { %v2481_v41 = vpop.f32.mrf.mxu3  ;;  %2659 = vmatpush.bf16.msra.mxu2 %v4078_v33  ;;  %v4782_v33 = vld [vmem:[#allocation11 + $0x58] sm:$0xff] }
 0x191   :  { %v4781_v41 = vld [vmem:[#allocation11 + $0x50] sm:$0xff] }
 0x192   :  { %2620 = vmatpush.bf16.msrb.mxu0 %v4202_v7  ;;  %2962 = vmatpush.bf16.msrb.mxu1 %v4783_v31 }
 0x193   :  { %2660 = vmatmul.bf16.vlgmr.msra.gmra.mxu2 %v5161_v61  ;;  %v4752_v61 = vld [vmem:[#allocation8 + $0x36c] sm:$0xf]  ;;  %2951 = vmatpush.bf16.msrb.mxu3 %v4773_v26 }
 0x194   :  { %v4254_v54 = vor.u32 %v4752_v61, %v4251_v25  ;;  %2972 = vmatpush.bf16.msrb.mxu2 %v4794_v36  ;;  %v4788_v61 = vld [vmem:[#allocation11 + $0x88] sm:$0xff] }
 0x195   :  { %2621 = vmatmul.bf16.vlgmr.msrb.gmra.mxu0 %v5169_v34 }
 0x196   :  { %2665 = vmatpush.bf16.msra.mxu0 %v4318_v16  ;;  %2963 = vmatpush.bf16.msrb.mxu1 %v4782_v33 }
 0x197   :  { %2952 = vmatpush.bf16.msrb.mxu3 %v4772_v51 }
 0x198   :  { %v2492_v58 = vpop.f32.mrf.mxu1  ;;  %2973 = vmatpush.bf16.msrb.mxu2 %v4793_v42 }
 0x199   :  { %v5179_v60 = vadd.f32 %v2492_v58, %v2480_v30 }
 0x19a   :  { %2666 = vmatpush.bf16.msra.mxu0 %v4302_v28  ;;  %2964 = vmatpush.bf16.msrb.mxu1 %v4781_v41 }
 0x19b   :  { %2953 = vmatpush.bf16.msrb.mxu3 %v4771_v2 }
 0x19c   :  { %2974 = vmatpush.bf16.msrb.mxu2 %v4792_v6 }
 0x19e   :  { %2667 = vmatpush.bf16.msra.mxu0 %v4286_v48  ;;  %2965 = vmatpush.bf16.msrb.mxu1 %v4780_v10 }
 0x1a0   :  { %v2494_v46 = vpop.f32.mrf.mxu1  ;;  %2975 = vmatpush.bf16.msrb.mxu2 %v4791_v47 }
 0x1a2   :  { %2668 = vmatpush.bf16.msra.mxu0 %v4270_v52  ;;  %2966 = vmatpush.bf16.msrb.mxu1 %v4779_v44 }
 0x1a4   :  { %2976 = vmatpush.bf16.msrb.mxu2 %v4790_v50 }
 0x1a6   :  { %2669 = vmatpush.bf16.msra.mxu0 %v4254_v54 }
 0x1a8   :  { %v2531_v59 = vpop.f32.mrf.mxu3  ;;  %v2544_v12 = vpop.f32.mrf.mxu1  ;;  %2977 = vmatpush.bf16.msrb.mxu2 %v4789_v57 }
 0x1a9   :  { %v2532_v11 = vadd.f32 %v2531_v59, %v1823_v9 }
 0x1aa   :  { %2670 = vmatpush.bf16.msra.mxu0 %v4238_v63  ;;  %v4801_v63 = vld [vmem:[#allocation11 + $0xf0] sm:$0xff] }
 0x1ab   :  { %v5182_v13 = vadd.f32 %v2544_v12, %v2532_v11  ;;  %v4797_v11 = vld [vmem:[#allocation11 + $0xd0] sm:$0xff] }
 0x1ac   :  { %2978 = vmatpush.bf16.msrb.mxu2 %v4788_v61 }
 0x1ae   :  { %2671 = vmatpush.bf16.msra.mxu0 %v4222_v3 }
 0x1b0   :  { %v2533_v37 = vpop.f32.mrf.mxu3  ;;  %v2546_v15 = vpop.f32.mrf.mxu1  ;;  %2979 = vmatpush.bf16.msrb.mxu2 %v4787_v56 }
 0x1b1   :  { %v4798_v37 = vld [vmem:[#allocation11 + $0xd8] sm:$0xff] }
 0x1b2   :  { %2672 = vmatpush.bf16.msra.mxu0 %v4206_v8 }
 0x1b5   :  { %2673 = vmatmul.bf16.vlgmr.msra.gmra.mxu0 %v5169_v34 }
 0x1b6   :  { %2985 = vmatpush.bf16.msrb.mxu0 %v4802_v35 }
 0x1ba   :  { %2986 = vmatpush.bf16.msrb.mxu0 %v4801_v63 }
 0x1be   :  { %2987 = vmatpush.bf16.msrb.mxu0 %v4800_v1 }
 0x1c0   :  { %v2596_v19 = vpop.f32.mrf.mxu1 }
 0x1c2   :  { %2988 = vmatpush.bf16.msrb.mxu0 %v4799_v4 }
 0x1c6   :  { %2989 = vmatpush.bf16.msrb.mxu0 %v4798_v37 }
 0x1c8   :  { %v2583_v17 = vpop.f32.mrf.mxu3  ;;  %v2598_v34 = vpop.f32.mrf.mxu1 }
 0x1c9   :  { %v2584_v62 = vadd.f32 %v2583_v17, %v1824_v55  ;;  %v4795_v55 = vld [vmem:[#allocation11 + $0xc0] sm:$0xff] }
 0x1ca   :  { %2990 = vmatpush.bf16.msrb.mxu0 %v4797_v11 }
 0x1cb   :  { %v5186_v20 = vadd.f32 %v2596_v19, %v2584_v62 }
 0x1ce   :  { %2991 = vmatpush.bf16.msrb.mxu0 %v4796_v14 }
 0x1d0   :  { %v2585_v22 = vpop.f32.mrf.mxu3 }
 0x1d2   :  { %2992 = vmatpush.bf16.msrb.mxu0 %v4795_v55 }
 0x1d4   :  { %v2505_v29 = vpop.f32.mrf.mxu2 }
 0x1d5   :  { %v2506_v53 = vadd.f32 %v2505_v29, %v5179_v60 }
 0x1dc   :  { %v2507_v7 = vpop.f32.mrf.mxu2 }
 0x1e0   :  { %v2648_v43 = vpop.f32.mrf.mxu1 }
 0x1e4   :  { %v2557_v49 = vpop.f32.mrf.mxu2 }
 0x1e5   :  { %v2558_v60 = vadd.f32 %v2557_v49, %v5182_v13 }
 0x1e8   :  { %v2635_v39 = vpop.f32.mrf.mxu3  ;;  %v2650_v48 = vpop.f32.mrf.mxu1 }
 0x1e9   :  { %v2636_v40 = vadd.f32 %v2635_v39, %v1825_v32  ;;  %v4814_v32 = vld [vmem:[%s5207_s6] ss:$0 sm:$0xff] }
 0x1eb   :  { %v5189_v16 = vadd.f32 %v2648_v43, %v2636_v40 }
 0x1ec   :  { %v2559_v52 = vpop.f32.mrf.mxu2 }
 0x1f0   :  { %v2637_v28 = vpop.f32.mrf.mxu3 }
 0x1f2   :  { %v2518_v25 = vpop.f32.mrf.mxu0 }
 0x1f3   :  { %v2519_v54 = vadd.f32 %v2518_v25, %v2506_v53 }
 0x1f5   :  { %v2678_v30 = vmax.f32 %v2519_v54, 0.0 }
 0x1f6   :  { %v2609_v58 = vpop.f32.mrf.mxu2 }
 0x1f7   :  { %v2682_v59 = vpack.c.bf16 %v2678_v30, %v2678_v30  ;;  %v2610_v15 = vadd.f32 %v2609_v58, %v5186_v20 }
 0x1f9   :  { %2954 = vmatmul.bf16.vlgmr.msrb.gmra.mxu3 %v2682_v59 }
 0x1fa   :  { %v2520_v0 = vpop.f32.mrf.mxu0 }
 0x1fe   :  { %v2611_v3 = vpop.f32.mrf.mxu2 }
 0x202   :  { %v2570_v5 = vpop.f32.mrf.mxu0 }
 0x203   :  { %v2571_v46 = vadd.f32 %v2570_v5, %v2558_v60 }
 0x205   :  { %v2679_v8 = vmax.f32 %v2571_v46, 0.0 }
 0x207   :  { %v2683_v9 = vpack.c.bf16 %v2679_v8, %v2679_v8 }
 0x209   :  { %2967 = vmatmul.bf16.vlgmr.msrb.gmra.mxu1 %v2683_v9 }
 0x20a   :  { %v2572_v12 = vpop.f32.mrf.mxu0 }
 0x212   :  { %v2622_v45 = vpop.f32.mrf.mxu0 }
 0x213   :  { %v2623_v17 = vadd.f32 %v2622_v45, %v2610_v15 }
 0x215   :  { %v2680_v13 = vmax.f32 %v2623_v17, 0.0 }
 0x216   :  { %v2661_v62 = vpop.f32.mrf.mxu2 }
 0x217   :  { %v2684_v18 = vpack.c.bf16 %v2680_v13, %v2680_v13  ;;  %v2662_v22 = vadd.f32 %v2661_v62, %v5189_v16 }
 0x219   :  { %2980 = vmatmul.bf16.vlgmr.msrb.gmra.mxu2 %v2684_v18 }
 0x21a   :  { %v2624_v19 = vpop.f32.mrf.mxu0 }
 0x21e   :  { %v2663_v21 = vpop.f32.mrf.mxu2 }
 0x232   :  { %v2674_v23 = vpop.f32.mrf.mxu0 }
 0x233   :  { %v2675_v24 = vadd.f32 %v2674_v23, %v2662_v22 }
 0x235   :  { %v2681_v34 = vmax.f32 %v2675_v24, 0.0 }
 0x237   :  { %v2685_v26 = vpack.c.bf16 %v2681_v34, %v2681_v34 }
 0x239   :  { %2993 = vmatmul.bf16.vlgmr.msrb.gmra.mxu0 %v2685_v26 }
 0x23a   :  { %v2676_v27 = vpop.f32.mrf.mxu0 }
 0x27c   :  { %v2955_v51 = vpop.f32.mrf.mxu3 }
 0x27d   :  { %v2956_v33 = vadd.f32 %v4814_v32, %v2955_v51 }
 0x284   :  { %v2957_v20 = vpop.f32.mrf.mxu3 }
 0x286   :  { %v2968_v38 = vpop.f32.mrf.mxu1 }
 0x287   :  { %v2969_v36 = vadd.f32 %v2968_v38, %v2956_v33 }
 0x28e   :  { %v2970_v2 = vpop.f32.mrf.mxu1 }
 0x29c   :  { %v2981_v31 = vpop.f32.mrf.mxu2 }
 0x29d   :  { %v2982_v39 = vadd.f32 %v2981_v31, %v2969_v36 }
 0x2a4   :  { %v2983_v29 = vpop.f32.mrf.mxu2 }
 0x2b6   :  { %v2994_v40 = vpop.f32.mrf.mxu0 }
 0x2b7   :  { %v2995_v41 = vadd.f32 %v2994_v40, %v2982_v39 }
 0x2b9   :  { %2998 = vst [vmem:[#allocation13] sm:$0xff] %v2995_v41 }
 0x2ba   :  { %3009 = dma.vmem_to_hbm [thread:$0]  %s3005_s9, 128, %s3007_s12, [#allocation4]  }
 0x2be   :  { %v2996_v42 = vpop.f32.mrf.mxu0 }
 0x2bf   :  { %4991 = dma.done.wait [#allocation4], 128  }
 0x2c0   :  { %4992 = vsyncadd [#allocation4], 4294967168 }
 0x2c1   :  { %3014 = vsyncpa [#allocation3], 1 }
 0x2c2   :  { %3015 = vsyncpa [#allocation6], 1 }
 0x2c3   :  { %3016 = vsyncpa [#allocation9], 1 }
 0x2c4   :  { %3017 = vsyncpa [#allocation12], 1 }
 0x2c5   :  { %3018 = vsyncpa [#allocation4], 1 }

</bundles_post_ra>
